<compile_context>
chip_gen: v7x
topology: tpu7x:2x2x1
jax: 0.10.0
libtpu: 0.0.40
codegen_flags: <defaults>
</compile_context>

<pallas_src>
import math

import jax
import jax.numpy as jnp
from jax.experimental import pallas as pl
from jax.experimental.pallas import tpu as pltpu

TILE = 27      # number of mahjong tile types (logical conv width)
WPAD = 32      # conv width padded to a sublane multiple (27 -> 32)
LANE = 128     # lane-dense padding for every feature dimension
CHUNK = 8      # candidates per grid step (8 * 32 = 256 activation rows)


def _round_up(n, m):
    return ((n + m - 1) // m) * m


# ----------------------------------------------------------------------------
# The fused Pallas kernel: conv trunk + residual blocks + head + masked softmax
# ----------------------------------------------------------------------------
def _fused_net_kernel(*refs):
    """Fused sub-net forward (one grid step = one CHUNK of candidates).

    refs layout (inputs ..., output, scratch):
      x       (chunk*WPAD, CP) f32   rows = (candidate, w); rows w>=27 are zero
      rmask   (chunk*WPAD, 1)  f32   1.0 for real rows (w < 27), 0.0 padding rows
      hmask   (chunk, NP)      f32   head/softmax column mask (1.0 = valid logit)
      w1      (3*CP, F) bf16,  b1 (1, F) f32     conv1, taps packed [x[w-1]|x[w]|x[w+1]]
      per block: wa (3F, F) bf16, ba (1, F) f32, wb (3F, F) bf16, bb (1, F) f32
      wh_hbm  (WPAD*F, NP) bf16      head weight, left in HBM (manually prefetched)
      bh      (1, NP) f32
      out     (chunk, NP) f32        probabilities
      wh_vmem (WPAD*F, NP) bf16      VMEM landing buffer for the head weight
      wh_sem  DMA semaphore
    """
    x_ref, rmask_ref, hmask_ref, w1_ref, b1_ref = refs[:5]
    num_blocks = (len(refs) - 10) // 4
    blk_refs = [refs[5 + 4 * i: 9 + 4 * i] for i in range(num_blocks)]
    wh_hbm, bh_ref, out_ref, wh_vmem, wh_sem = refs[-5:]

    # Prefetch the head weight (largest single transfer) behind the conv trunk.
    # start/wait happen every grid step so the pattern stays correct when the batch
    # axis is split across TensorCores ("parallel" megacore scheduling).
    head_cp = pltpu.make_async_copy(wh_hbm, wh_vmem, wh_sem)
    head_cp.start()

    mp = x_ref.shape[0]
    feat = b1_ref.shape[1]
    chunk_b = out_ref.shape[0]
    wpad = mp // chunk_b

    # Hoisted once: JAX does not CSE broadcast_in_dim inside the unrolled loop.
    rmask_b = jnp.broadcast_to(rmask_ref[...], (mp, feat))

    def conv3(h, w_ref, b_ref):
        # Conv1d(k=3, pad=1) as ONE MXU matmul: the three taps are concatenated along
        # lanes (K = 3*C) against tap-packed weights.  Padding rows stay zero (rmask)
        # so the sublane roll wrap-around only ever reads zeros (also across batch
        # boundaries inside a chunk).
        h_l = pltpu.roll(h, 1, 0)          # row r sees row r-1  (tap x[w-1])
        h_r = pltpu.roll(h, mp - 1, 0)     # row r sees row r+1  (tap x[w+1])
        hcat = jnp.concatenate(
            [h_l.astype(jnp.bfloat16), h.astype(jnp.bfloat16),
             h_r.astype(jnp.bfloat16)], axis=-1)
        return jnp.dot(hcat, w_ref[...],
                       preferred_element_type=jnp.float32) + b_ref[...]

    # --- trunk: conv1 + residual blocks (activation never leaves VMEM/vregs) ------
    h = jnp.maximum(conv3(x_ref[...], w1_ref, b1_ref), 0.0) * rmask_b
    for wa_ref, ba_ref, wb_ref, bb_ref in blk_refs:
        h1 = jnp.maximum(conv3(h, wa_ref, ba_ref), 0.0) * rmask_b
        h = jnp.maximum(conv3(h1, wb_ref, bb_ref) + h, 0.0) * rmask_b

    # --- head: ONE K = WPAD*F contraction instead of 27 tiny matmuls --------------
    # Flatten (chunk, WPAD, F) -> (chunk, WPAD*F) with a lane concat: every piece is
    # a full 128-lane tile, so the concat is tile-aligned (no risky lane-merge reshape).
    h3 = h.astype(jnp.bfloat16).reshape(chunk_b, wpad, feat)
    hflat = jnp.concatenate([h3[:, w, :] for w in range(wpad)], axis=-1)
    head_cp.wait()
    logits = jnp.dot(hflat, wh_vmem[...],
                     preferred_element_type=jnp.float32) + bh_ref[...]

    # --- masked softmax with all-masked-row guard (exact reciprocal) --------------
    m = hmask_ref[...]
    valid = (m > 0.0).astype(jnp.float32)
    z = jnp.where(m > 0.0, logits, jnp.float32(-1e30))
    z = z - jnp.max(z, axis=-1, keepdims=True)
    e = jnp.exp(z) * valid
    s = jnp.sum(e, axis=-1, keepdims=True)
    out_ref[...] = e * pl.reciprocal(jnp.maximum(s, jnp.float32(1e-30)))


def _apply_net(packed, feature, head_mask):
    """feature: (B, C, 27) f32; head_mask: (B, 128) f32 -> probs (B, 128) f32.

    All B candidates go through ONE pallas_call; the batch is tiled into CHUNK-sized
    grid steps marked "parallel" (uses both TensorCores on v7x, bounds VMEM per step).
    """
    b, c, wdim = feature.shape
    cp = packed["w1"].shape[0] // 3
    npad = packed["bh"].shape[1]

    chunk = min(CHUNK, b)
    bp = _round_up(b, chunk)
    grid = (bp // chunk,)

    # NCW -> rows (b, w) on sublanes, channels on lanes; pad W 27->32, C->CP, B->bp.
    x = jnp.transpose(feature.astype(jnp.float32), (0, 2, 1))
    x = jnp.pad(x, ((0, bp - b), (0, WPAD - wdim), (0, cp - c)))
    x = x.reshape(bp * WPAD, cp)
    rmask = (jnp.arange(chunk * WPAD, dtype=jnp.int32) % WPAD < wdim)
    rmask = rmask.astype(jnp.float32)[:, None]
    hmask = jnp.pad(head_mask.astype(jnp.float32), ((0, bp - b), (0, 0)))

    args = [x, rmask, hmask, packed["w1"], packed["b1"]]
    in_specs = [
        pl.BlockSpec((chunk * WPAD, cp), lambda i: (i, 0)),
        pl.BlockSpec((chunk * WPAD, 1), lambda i: (0, 0)),
        pl.BlockSpec((chunk, npad), lambda i: (i, 0)),
        pl.BlockSpec(packed["w1"].shape, lambda i: (0, 0)),
        pl.BlockSpec(packed["b1"].shape, lambda i: (0, 0)),
    ]
    # TODO(synk): for very deep nets on v5e, stream block weights over a grid axis
    #             (index_map lambda i: (i, 0)) instead of keeping them all resident.
    for blk in packed["blocks"]:
        for name in ("wa", "ba", "wb", "bb"):
            arr = blk[name]
            args.append(arr)
            in_specs.append(pl.BlockSpec(arr.shape, lambda i: (0, 0)))
    args.append(packed["wh"])
    in_specs.append(pl.BlockSpec(memory_space=pl.ANY))   # stays in HBM; manual DMA
    args.append(packed["bh"])
    in_specs.append(pl.BlockSpec(packed["bh"].shape, lambda i: (0, 0)))

    out = pl.pallas_call(
        _fused_net_kernel,
        out_shape=jax.ShapeDtypeStruct((bp, npad), jnp.float32),
        grid=grid,
        in_specs=in_specs,
        out_specs=pl.BlockSpec((chunk, npad), lambda i: (i, 0)),
        scratch_shapes=[pltpu.VMEM(packed["wh"].shape, jnp.bfloat16),
                        pltpu.SemaphoreType.DMA],
        compiler_params=pltpu.CompilerParams(
            dimension_semantics=("parallel",),
            vmem_limit_bytes=32 * 1024 * 1024),
    )(*args)
    return out[:b]


# ----------------------------------------------------------------------------
# Jitted wrappers (argmax / flags computed on device; one sync per decision)
# ----------------------------------------------------------------------------
@jax.jit
def _judge_forward(packed, feature):
    """judgeNet: (B, C, 27) -> probs (B, 2), flag (B,) where flag = p0 > p1."""
    b = feature.shape[0]
    npad = packed["bh"].shape[1]
    hmask = jnp.zeros((b, npad), jnp.float32).at[:, :2].set(1.0)
    p = _apply_net(packed, feature, hmask)[:, :2]
    return p, p[:, 0] > p[:, 1]


@jax.jit
def _play_forward(packed, feature, mask):
    """playNet: (B, C, 27), mask -> masked-softmax probs (B, 27), argmax (B,)."""
    b = feature.shape[0]
    npad = packed["bh"].shape[1]
    m = jnp.asarray(mask, jnp.float32)
    if m.ndim == 1:
        m = m[None, :]
    m = jnp.broadcast_to(m, (b, TILE))
    hmask = jnp.zeros((b, npad), jnp.float32).at[:, :TILE].set(m)
    p = _apply_net(packed, feature, hmask)[:, :TILE]
    return p, jnp.argmax(p, axis=-1)


@jax.jit
def _gang_candidates_forward(packed, feature, ids, vals):
    """Evaluate ALL gang candidates in ONE batched kernel call (one host sync)."""
    k = ids.shape[0]
    feat_b = jnp.broadcast_to(feature, (k,) + feature.shape[1:])
    extra = jnp.zeros((k, 1, TILE), jnp.float32)
    extra = extra.at[jnp.arange(k), 0, ids].set(vals)
    feat_b = jnp.concatenate([feat_b, extra], axis=1)
    npad = packed["bh"].shape[1]
    hmask = jnp.zeros((k, npad), jnp.float32).at[:, :2].set(1.0)
    p = _apply_net(packed, feat_b, hmask)[:, :2]
    return p, p[:, 0] > p[:, 1]


@jax.jit
def _richi_forward(richi_params, play_params, feature, mask):
    """Richi judge + play probs evaluated together -> single device->host sync."""
    b = feature.shape[0]
    npad_j = richi_params["bh"].shape[1]
    hmask_j = jnp.zeros((b, npad_j), jnp.float32).at[:, :2].set(1.0)
    p2 = _apply_net(richi_params, feature, hmask_j)[:, :2]
    flag = p2[:, 0] > p2[:, 1]
    npad_p = play_params["bh"].shape[1]
    m = jnp.asarray(mask, jnp.float32)
    if m.ndim == 1:
        m = m[None, :]
    m = jnp.broadcast_to(m, (b, TILE))
    hmask_p = jnp.zeros((b, npad_p), jnp.float32).at[:, :TILE].set(m)
    pp = _apply_net(play_params, feature, hmask_p)[:, :TILE]
    return p2, flag, pp, jnp.argmax(pp, axis=-1)


# ----------------------------------------------------------------------------
# Deterministic parameter init (padded + packed for the fused kernel)
# ----------------------------------------------------------------------------
def _init_conv(key, c_in, c_in_pad, hidden, f_pad):
    kw, kb = jax.random.split(key)
    w = jax.random.normal(kw, (3, c_in, hidden), jnp.float32) / math.sqrt(3 * c_in)
    b = 0.01 * jax.random.normal(kb, (hidden,), jnp.float32)
    w_p = jnp.zeros((3, c_in_pad, f_pad), jnp.float32).at[:, :c_in, :hidden].set(w)
    w_p = w_p.reshape(3 * c_in_pad, f_pad)     # taps packed along the contraction dim
    b_p = jnp.zeros((1, f_pad), jnp.float32).at[0, :hidden].set(b)
    return w_p.astype(jnp.bfloat16), b_p


def _init_net(key, c_in, num_blocks, hidden, n_out):
    f_pad = _round_up(hidden, LANE)
    c_pad = _round_up(c_in, LANE)
    n_pad = _round_up(n_out, LANE)
    keys = jax.random.split(key, 2 * num_blocks + 2)
    w1, b1 = _init_conv(keys[0], c_in, c_pad, hidden, f_pad)
    blocks = []
    for i in range(num_blocks):
        wa, ba = _init_conv(keys[1 + 2 * i], hidden, f_pad, hidden, f_pad)
        wb, bb = _init_conv(keys[2 + 2 * i], hidden, f_pad, hidden, f_pad)
        blocks.append({"wa": wa, "ba": ba, "wb": wb, "bb": bb})
    kh1, kh2 = jax.random.split(keys[-1])
    wh = jax.random.normal(kh1, (TILE, hidden, n_out), jnp.float32)
    wh = wh / math.sqrt(hidden * TILE)
    bh = 0.01 * jax.random.normal(kh2, (n_out,), jnp.float32)
    # Flatten-(w, c) head weight, zero-padded to (WPAD*F, NP) so the in-kernel
    # lane-concat flatten and the single K = WPAD*F matmul line up exactly.
    wh_p = jnp.zeros((WPAD, f_pad, n_pad), jnp.float32).at[:TILE, :hidden, :n_out].set(wh)
    wh_p = wh_p.reshape(WPAD * f_pad, n_pad)
    bh_p = jnp.zeros((1, n_pad), jnp.float32).at[0, :n_out].set(bh)
    return {"w1": w1, "b1": b1, "blocks": blocks,
            "wh": wh_p.astype(jnp.bfloat16), "bh": bh_p}


# ----------------------------------------------------------------------------
# ActorModel: host-side dispatch mirroring the PyTorch module's forward()
# ----------------------------------------------------------------------------
class ActorModel:
    def __init__(self, obs_dim, num_blocks, hidden_dim=256, key=None):
        if key is None:
            key = jax.random.PRNGKey(0)
        ks = jax.random.split(key, 6)
        self.win = _init_net(ks[0], obs_dim, num_blocks, hidden_dim, 2)
        self.richi = _init_net(ks[1], obs_dim, num_blocks, hidden_dim, 2)
        self.gang = _init_net(ks[2], obs_dim + 1, num_blocks, hidden_dim, 2)
        self.peng = _init_net(ks[3], obs_dim + 1, num_blocks, hidden_dim, 2)
        self.chi = _init_net(ks[4], obs_dim + 1, num_blocks, hidden_dim, 2)
        self.play = _init_net(ks[5], obs_dim, num_blocks, hidden_dim, TILE)

    @staticmethod
    def _with_id_row(feature, idx, value):
        row = jnp.zeros((feature.shape[0], 1, TILE), jnp.float32)
        row = row.at[:, :, idx].set(value)
        return jnp.concatenate([feature, row], axis=1)

    def forward(self, obj, guzhang_first=False, determine=True):
        target = obj["target"]
        feature = jnp.asarray(obj["feature"], jnp.float32)
        if feature.ndim == 2:
            feature = feature[None, :, :]
        out = jnp.zeros((8, TILE), jnp.float32)

        if target == "win":
            return (jnp.zeros((8, TILE), jnp.float32),
                    jnp.array([1.0, 0.0], jnp.float32), True)

        if target == "gang":
            angang_ids = list(obj["angang_ids"])
            bugang_ids = list(obj["bugang_ids"])
            output = {"id": None, "type": None}
            action = jnp.zeros((TILE,), jnp.float32)
            if not angang_ids and not bugang_ids:
                return out, action, output
            ids = jnp.asarray(angang_ids + bugang_ids, jnp.int32)
            vals = jnp.asarray([4.0] * len(angang_ids) + [1.0] * len(bugang_ids),
                               jnp.float32)
            # ONE batched kernel call over all candidates, ONE host sync.
            p_all, flags = jax.device_get(
                _gang_candidates_forward(self.gang, feature, ids, vals))
            na = len(angang_ids)
            for j, idx in enumerate(angang_ids):
                action = jnp.asarray(p_all[j])
                if determine and bool(flags[j]):
                    out = out.at[0, idx].set(4.0)
                    output["id"], output["type"] = idx, "angang"
                    return out, action, output
                # TODO(synk): stochastic (determine=False) random_choice sampling is
                #             treated as "reject"; only the deterministic path is exact.
                out = out.at[0, idx].set(-1.0)
            for j, idx in enumerate(bugang_ids):
                action = jnp.asarray(p_all[na + j])
                if determine and bool(flags[na + j]):
                    out = out.at[1, idx].set(1.0)
                    output["id"], output["type"] = idx, "bugang"
                    return out, action, output
                # reference quirk preserved: rejected bugang marks row 0 when determine
                out = out.at[0 if determine else 1, idx].set(-1.0)
            return out, action, output

        if target == "richi":
            mask = jnp.asarray(obj["mask"], jnp.float32)
            # judge + play computed together -> one host sync for the branch decision
            p2, flag, pp, pidx = jax.device_get(
                _richi_forward(self.richi, self.play, feature, mask))
            action = jnp.asarray(p2[0])
            output = {"flag": False}
            if determine:
                if bool(flag[0]):
                    output["flag"] = True
                    play_id = int(pidx[0])
                    output["play"] = play_id
                    out = out.at[2, :].set(1.0)
                    out = out.at[3, play_id].set(1.0)
                else:
                    out = out.at[2, :].set(-1.0)
                return out, action, output
            # TODO(synk): stochastic (determine=False) random_choice path not replicated.
            return out, action, output

        if target == "play":
            # TODO(synk): guzhang_first host-side tile-table heuristic not replicated.
            # TODO(synk): determine=False samples from p (random_choice); argmax used here.
            mask = jnp.asarray(obj["mask"], jnp.float32)
            p, idx = _play_forward(self.play, feature, mask)
            play_id = int(idx[0])                      # single host sync
            action = jnp.squeeze(p)
            out = out.at[3, play_id].set(1.0)
            return out, action, {"p": p, "play": play_id}

        if target in ("others_win", "qianggang"):
            p2, flag = jax.device_get(_judge_forward(self.win, feature))
            action = jnp.asarray(p2[0])
            output = {"flag": False, "id": obj.get("id")}
            if bool(flag[0]):
                output["flag"] = True
                out = out.at[4, :].set(1.0)
            else:
                out = out.at[4, :].set(-1.0)
            return out, action, output

        if target in ("others_gang", "others_peng"):
            idx = int(obj["id"])
            feat = self._with_id_row(feature, idx, 1.0)
            params = self.gang if target == "others_gang" else self.peng
            p2, flag = jax.device_get(_judge_forward(params, feat))
            action = jnp.asarray(p2[0])
            accept = bool(flag[0])
            output = {"flag": accept, "id": idx}
            if target == "others_gang":
                out = out.at[5, idx].set(1.0 if accept else -1.0)
            else:
                out = out.at[6, :].set(1.0 if accept else -1.0)
            return out, action, output

        # TODO(synk): 'others_chi' (ChiNet candidate-set search / while-loop) not replicated.
        raise AssertionError(f"unsupported target: {target}")


# ----------------------------------------------------------------------------
if __name__ == "__main__":
    obs_dim, num_blocks, hidden = 8, 1, 128
    model = ActorModel(obs_dim, num_blocks, hidden_dim=hidden, key=jax.random.PRNGKey(0))

    kf, km, kb = jax.random.split(jax.random.PRNGKey(0), 3)
    feature = jax.random.uniform(kf, (obs_dim, TILE), jnp.float32)   # single obs (C, 27)
    mask = (jax.random.uniform(km, (1, TILE)) > 0.3).astype(jnp.float32)
    mask = mask.at[0, 0].set(1.0)  # ensure at least one legal tile

    # 'play': fused playNet (conv trunk + single-matmul head + masked softmax)
    out, action, output = model.forward({"target": "play", "feature": feature, "mask": mask})
    jax.block_until_ready((out, action))
    assert out.shape == (8, TILE) and action.shape == (TILE,)
    assert abs(float(action.sum()) - 1.0) < 1e-3
    assert float(jnp.sum(action * (1.0 - mask[0]))) < 1e-6   # masked tiles get prob 0

    # 'gang': ALL angang/bugang candidates evaluated in ONE batched kernel call
    outg, actg, infog = model.forward({"target": "gang", "feature": feature,
                                       "angang_ids": [1, 5, 7], "bugang_ids": [2, 11]})
    jax.block_until_ready(outg)
    assert outg.shape == (8, TILE) and actg.shape == (2,)

    # 'others_win': fused WinNet (2-way softmax head)
    out2, action2, info2 = model.forward({"target": "others_win", "feature": feature, "id": 3})
    jax.block_until_ready(out2)
    assert action2.shape == (2,) and abs(float(action2.sum()) - 1.0) < 1e-3

    # 'others_gang': GangNet on (obs_dim + 1) channels (same padded kernel shape)
    out3, action3, info3 = model.forward({"target": "others_gang", "feature": feature, "id": 5})
    jax.block_until_ready(out3)
    assert action3.shape == (2,)

    # 'richi': judge + play fused into a single jit / single host sync
    out4, action4, info4 = model.forward({"target": "richi", "feature": feature, "mask": mask})
    jax.block_until_ready(out4)
    assert action4.shape == (2,)

    # batched playNet (B = 2, identical candidates) -> identical rows (no cross-batch leak)
    feat_b = jnp.stack([feature, feature], axis=0)
    p_b, idx_b = _play_forward(model.play, feat_b, jnp.ones((2, TILE), jnp.float32))
    jax.block_until_ready(p_b)
    assert p_b.shape == (2, TILE) and idx_b.shape == (2,)
    assert abs(float(p_b.sum()) - 2.0) < 1e-3
    assert float(jnp.max(jnp.abs(p_b[0] - p_b[1]))) < 1e-5

    print("KERNEL_OK")
</pallas_src>

<mosaic_0001>
module attributes {stable_mosaic.version = 11 : i64} {
  func.func @_fused_net_kernel(%arg0: i32, %arg1: memref<32x128xf32, #tpu.memory_space<vmem>>, %arg2: memref<32x1xf32, #tpu.memory_space<vmem>>, %arg3: memref<1x128xf32, #tpu.memory_space<vmem>>, %arg4: memref<384x128xbf16, #tpu.memory_space<vmem>>, %arg5: memref<1x128xf32, #tpu.memory_space<vmem>>, %arg6: memref<384x128xbf16, #tpu.memory_space<vmem>>, %arg7: memref<1x128xf32, #tpu.memory_space<vmem>>, %arg8: memref<384x128xbf16, #tpu.memory_space<vmem>>, %arg9: memref<1x128xf32, #tpu.memory_space<vmem>>, %arg10: memref<4096x128xbf16, #tpu.memory_space<any>>, %arg11: memref<1x128xf32, #tpu.memory_space<vmem>>, %arg12: memref<1x128xf32, #tpu.memory_space<vmem>>, %arg13: memref<4096x128xbf16, #tpu.memory_space<vmem>>, %arg14: memref<!tpu.dma_semaphore, #tpu.memory_space<semaphore_mem>>) attributes {dimension_semantics = [#tpu.dimension_semantics<parallel>], iteration_bounds = array<i64: 1>, scalar_prefetch = 0 : i64, scratch_operands = 2 : i64, tpu.core_type = #tpu.core_type<tc>, window_params = [{transform_indices = @transform_0, window_bounds = array<i64: 32, 128>}, {pipeline_mode = #tpu.pipeline_mode<synchronous>, transform_indices = @transform_1, window_bounds = array<i64: 32, 1>}, {transform_indices = @transform_2, window_bounds = array<i64: 1, 128>}, {pipeline_mode = #tpu.pipeline_mode<synchronous>, transform_indices = @transform_3, window_bounds = array<i64: 384, 128>}, {pipeline_mode = #tpu.pipeline_mode<synchronous>, transform_indices = @transform_4, window_bounds = array<i64: 1, 128>}, {pipeline_mode = #tpu.pipeline_mode<synchronous>, transform_indices = @transform_5, window_bounds = array<i64: 384, 128>}, {pipeline_mode = #tpu.pipeline_mode<synchronous>, transform_indices = @transform_6, window_bounds = array<i64: 1, 128>}, {pipeline_mode = #tpu.pipeline_mode<synchronous>, transform_indices = @transform_7, window_bounds = array<i64: 384, 128>}, {pipeline_mode = #tpu.pipeline_mode<synchronous>, transform_indices = @transform_8, window_bounds = array<i64: 1, 128>}, {}, {pipeline_mode = #tpu.pipeline_mode<synchronous>, transform_indices = @transform_10, window_bounds = array<i64: 1, 128>}, {transform_indices = @transform_11, window_bounds = array<i64: 1, 128>}]} {
    tpu.enqueue_dma source(%arg10 : memref<4096x128xbf16, #tpu.memory_space<any>>) target(%arg13 : memref<4096x128xbf16, #tpu.memory_space<vmem>>) target_semaphore(%arg14 : memref<!tpu.dma_semaphore, #tpu.memory_space<semaphore_mem>>)
    %c0 = arith.constant 0 : index
    %c0_0 = arith.constant 0 : index
    %0 = vector.load %arg2[%c0, %c0_0] : memref<32x1xf32, #tpu.memory_space<vmem>>, vector<32x1xf32>
    %1 = vector.shape_cast %0 : vector<32x1xf32> to vector<32x1xf32>
    %2 = vector.broadcast %1 : vector<32x1xf32> to vector<32x128xf32>
    %c0_1 = arith.constant 0 : index
    %c0_2 = arith.constant 0 : index
    %3 = vector.load %arg1[%c0_1, %c0_2] : memref<32x128xf32, #tpu.memory_space<vmem>>, vector<32x128xf32>
    %c1_i32 = arith.constant 1 : i32
    %4 = tpu.dynamic_rotate %3 by %c1_i32 dim 0 : vector<32x128xf32>, i32 -> vector<32x128xf32>
    %c31_i32 = arith.constant 31 : i32
    %5 = tpu.dynamic_rotate %3 by %c31_i32 dim 0 : vector<32x128xf32>, i32 -> vector<32x128xf32>
    %6 = arith.truncf %4 : vector<32x128xf32> to vector<32x128xbf16>
    %7 = arith.truncf %3 : vector<32x128xf32> to vector<32x128xbf16>
    %8 = arith.truncf %5 : vector<32x128xf32> to vector<32x128xbf16>
    %9 = tpu.concatenate %6, %7, %8 in 1 : vector<32x128xbf16>, vector<32x128xbf16>, vector<32x128xbf16> -> vector<32x384xbf16>
    %c0_3 = arith.constant 0 : index
    %c0_4 = arith.constant 0 : index
    %10 = vector.load %arg4[%c0_3, %c0_4] : memref<384x128xbf16, #tpu.memory_space<vmem>>, vector<384x128xbf16>
    %cst = arith.constant dense<0.000000e+00> : vector<32x128xf32>
    %11 = tpu.matmul %9, %10, %cst {dimension_numbers = #tpu.dot_dimension_numbers<[1], [0], [0], [1], [0, 0, 1, 1], [], []>} : vector<32x384xbf16>, vector<384x128xbf16>, vector<32x128xf32> -> vector<32x128xf32>
    %c0_5 = arith.constant 0 : index
    %c0_6 = arith.constant 0 : index
    %12 = vector.load %arg5[%c0_5, %c0_6] : memref<1x128xf32, #tpu.memory_space<vmem>>, vector<1x128xf32>
    %13 = vector.broadcast %12 : vector<1x128xf32> to vector<32x128xf32>
    %14 = arith.addf %11, %13 : vector<32x128xf32>
    %cst_7 = arith.constant 0.000000e+00 : f32
    %15 = vector.broadcast %cst_7 : f32 to vector<32x128xf32>
    %16 = arith.maximumf %14, %15 : vector<32x128xf32>
    %17 = arith.mulf %16, %2 : vector<32x128xf32>
    %c1_i32_8 = arith.constant 1 : i32
    %18 = tpu.dynamic_rotate %17 by %c1_i32_8 dim 0 : vector<32x128xf32>, i32 -> vector<32x128xf32>
    %c31_i32_9 = arith.constant 31 : i32
    %19 = tpu.dynamic_rotate %17 by %c31_i32_9 dim 0 : vector<32x128xf32>, i32 -> vector<32x128xf32>
    %20 = arith.truncf %18 : vector<32x128xf32> to vector<32x128xbf16>
    %21 = arith.truncf %17 : vector<32x128xf32> to vector<32x128xbf16>
    %22 = arith.truncf %19 : vector<32x128xf32> to vector<32x128xbf16>
    %23 = tpu.concatenate %20, %21, %22 in 1 : vector<32x128xbf16>, vector<32x128xbf16>, vector<32x128xbf16> -> vector<32x384xbf16>
    %c0_10 = arith.constant 0 : index
    %c0_11 = arith.constant 0 : index
    %24 = vector.load %arg6[%c0_10, %c0_11] : memref<384x128xbf16, #tpu.memory_space<vmem>>, vector<384x128xbf16>
    %cst_12 = arith.constant dense<0.000000e+00> : vector<32x128xf32>
    %25 = tpu.matmul %23, %24, %cst_12 {dimension_numbers = #tpu.dot_dimension_numbers<[1], [0], [0], [1], [0, 0, 1, 1], [], []>} : vector<32x384xbf16>, vector<384x128xbf16>, vector<32x128xf32> -> vector<32x128xf32>
    %c0_13 = arith.constant 0 : index
    %c0_14 = arith.constant 0 : index
    %26 = vector.load %arg7[%c0_13, %c0_14] : memref<1x128xf32, #tpu.memory_space<vmem>>, vector<1x128xf32>
    %27 = vector.broadcast %26 : vector<1x128xf32> to vector<32x128xf32>
    %28 = arith.addf %25, %27 : vector<32x128xf32>
    %cst_15 = arith.constant 0.000000e+00 : f32
    %29 = vector.broadcast %cst_15 : f32 to vector<32x128xf32>
    %30 = arith.maximumf %28, %29 : vector<32x128xf32>
    %31 = arith.mulf %30, %2 : vector<32x128xf32>
    %c1_i32_16 = arith.constant 1 : i32
    %32 = tpu.dynamic_rotate %31 by %c1_i32_16 dim 0 : vector<32x128xf32>, i32 -> vector<32x128xf32>
    %c31_i32_17 = arith.constant 31 : i32
    %33 = tpu.dynamic_rotate %31 by %c31_i32_17 dim 0 : vector<32x128xf32>, i32 -> vector<32x128xf32>
    %34 = arith.truncf %32 : vector<32x128xf32> to vector<32x128xbf16>
    %35 = arith.truncf %31 : vector<32x128xf32> to vector<32x128xbf16>
    %36 = arith.truncf %33 : vector<32x128xf32> to vector<32x128xbf16>
    %37 = tpu.concatenate %34, %35, %36 in 1 : vector<32x128xbf16>, vector<32x128xbf16>, vector<32x128xbf16> -> vector<32x384xbf16>
    %c0_18 = arith.constant 0 : index
    %c0_19 = arith.constant 0 : index
    %38 = vector.load %arg8[%c0_18, %c0_19] : memref<384x128xbf16, #tpu.memory_space<vmem>>, vector<384x128xbf16>
    %cst_20 = arith.constant dense<0.000000e+00> : vector<32x128xf32>
    %39 = tpu.matmul %37, %38, %cst_20 {dimension_numbers = #tpu.dot_dimension_numbers<[1], [0], [0], [1], [0, 0, 1, 1], [], []>} : vector<32x384xbf16>, vector<384x128xbf16>, vector<32x128xf32> -> vector<32x128xf32>
    %c0_21 = arith.constant 0 : index
    %c0_22 = arith.constant 0 : index
    %40 = vector.load %arg9[%c0_21, %c0_22] : memref<1x128xf32, #tpu.memory_space<vmem>>, vector<1x128xf32>
    %41 = vector.broadcast %40 : vector<1x128xf32> to vector<32x128xf32>
    %42 = arith.addf %39, %41 : vector<32x128xf32>
    %43 = arith.addf %42, %17 : vector<32x128xf32>
    %cst_23 = arith.constant 0.000000e+00 : f32
    %44 = vector.broadcast %cst_23 : f32 to vector<32x128xf32>
    %45 = arith.maximumf %43, %44 : vector<32x128xf32>
    %46 = arith.mulf %45, %2 : vector<32x128xf32>
    %47 = arith.truncf %46 : vector<32x128xf32> to vector<32x128xbf16>
    %48 = vector.shape_cast %47 : vector<32x128xbf16> to vector<1x32x128xbf16>
    %49 = vector.extract_strided_slice %48 {offsets = [0, 0, 0], sizes = [1, 1, 128], strides = [1, 1, 1]} : vector<1x32x128xbf16> to vector<1x1x128xbf16>
    %50 = vector.shape_cast %49 : vector<1x1x128xbf16> to vector<1x128xbf16>
    %51 = vector.extract_strided_slice %48 {offsets = [0, 1, 0], sizes = [1, 1, 128], strides = [1, 1, 1]} : vector<1x32x128xbf16> to vector<1x1x128xbf16>
    %52 = vector.shape_cast %51 : vector<1x1x128xbf16> to vector<1x128xbf16>
    %53 = vector.extract_strided_slice %48 {offsets = [0, 2, 0], sizes = [1, 1, 128], strides = [1, 1, 1]} : vector<1x32x128xbf16> to vector<1x1x128xbf16>
    %54 = vector.shape_cast %53 : vector<1x1x128xbf16> to vector<1x128xbf16>
    %55 = vector.extract_strided_slice %48 {offsets = [0, 3, 0], sizes = [1, 1, 128], strides = [1, 1, 1]} : vector<1x32x128xbf16> to vector<1x1x128xbf16>
    %56 = vector.shape_cast %55 : vector<1x1x128xbf16> to vector<1x128xbf16>
    %57 = vector.extract_strided_slice %48 {offsets = [0, 4, 0], sizes = [1, 1, 128], strides = [1, 1, 1]} : vector<1x32x128xbf16> to vector<1x1x128xbf16>
    %58 = vector.shape_cast %57 : vector<1x1x128xbf16> to vector<1x128xbf16>
    %59 = vector.extract_strided_slice %48 {offsets = [0, 5, 0], sizes = [1, 1, 128], strides = [1, 1, 1]} : vector<1x32x128xbf16> to vector<1x1x128xbf16>
    %60 = vector.shape_cast %59 : vector<1x1x128xbf16> to vector<1x128xbf16>
    %61 = vector.extract_strided_slice %48 {offsets = [0, 6, 0], sizes = [1, 1, 128], strides = [1, 1, 1]} : vector<1x32x128xbf16> to vector<1x1x128xbf16>
    %62 = vector.shape_cast %61 : vector<1x1x128xbf16> to vector<1x128xbf16>
    %63 = vector.extract_strided_slice %48 {offsets = [0, 7, 0], sizes = [1, 1, 128], strides = [1, 1, 1]} : vector<1x32x128xbf16> to vector<1x1x128xbf16>
    %64 = vector.shape_cast %63 : vector<1x1x128xbf16> to vector<1x128xbf16>
    %65 = vector.extract_strided_slice %48 {offsets = [0, 8, 0], sizes = [1, 1, 128], strides = [1, 1, 1]} : vector<1x32x128xbf16> to vector<1x1x128xbf16>
    %66 = vector.shape_cast %65 : vector<1x1x128xbf16> to vector<1x128xbf16>
    %67 = vector.extract_strided_slice %48 {offsets = [0, 9, 0], sizes = [1, 1, 128], strides = [1, 1, 1]} : vector<1x32x128xbf16> to vector<1x1x128xbf16>
    %68 = vector.shape_cast %67 : vector<1x1x128xbf16> to vector<1x128xbf16>
    %69 = vector.extract_strided_slice %48 {offsets = [0, 10, 0], sizes = [1, 1, 128], strides = [1, 1, 1]} : vector<1x32x128xbf16> to vector<1x1x128xbf16>
    %70 = vector.shape_cast %69 : vector<1x1x128xbf16> to vector<1x128xbf16>
    %71 = vector.extract_strided_slice %48 {offsets = [0, 11, 0], sizes = [1, 1, 128], strides = [1, 1, 1]} : vector<1x32x128xbf16> to vector<1x1x128xbf16>
    %72 = vector.shape_cast %71 : vector<1x1x128xbf16> to vector<1x128xbf16>
    %73 = vector.extract_strided_slice %48 {offsets = [0, 12, 0], sizes = [1, 1, 128], strides = [1, 1, 1]} : vector<1x32x128xbf16> to vector<1x1x128xbf16>
    %74 = vector.shape_cast %73 : vector<1x1x128xbf16> to vector<1x128xbf16>
    %75 = vector.extract_strided_slice %48 {offsets = [0, 13, 0], sizes = [1, 1, 128], strides = [1, 1, 1]} : vector<1x32x128xbf16> to vector<1x1x128xbf16>
    %76 = vector.shape_cast %75 : vector<1x1x128xbf16> to vector<1x128xbf16>
    %77 = vector.extract_strided_slice %48 {offsets = [0, 14, 0], sizes = [1, 1, 128], strides = [1, 1, 1]} : vector<1x32x128xbf16> to vector<1x1x128xbf16>
    %78 = vector.shape_cast %77 : vector<1x1x128xbf16> to vector<1x128xbf16>
    %79 = vector.extract_strided_slice %48 {offsets = [0, 15, 0], sizes = [1, 1, 128], strides = [1, 1, 1]} : vector<1x32x128xbf16> to vector<1x1x128xbf16>
    %80 = vector.shape_cast %79 : vector<1x1x128xbf16> to vector<1x128xbf16>
    %81 = vector.extract_strided_slice %48 {offsets = [0, 16, 0], sizes = [1, 1, 128], strides = [1, 1, 1]} : vector<1x32x128xbf16> to vector<1x1x128xbf16>
    %82 = vector.shape_cast %81 : vector<1x1x128xbf16> to vector<1x128xbf16>
    %83 = vector.extract_strided_slice %48 {offsets = [0, 17, 0], sizes = [1, 1, 128], strides = [1, 1, 1]} : vector<1x32x128xbf16> to vector<1x1x128xbf16>
    %84 = vector.shape_cast %83 : vector<1x1x128xbf16> to vector<1x128xbf16>
    %85 = vector.extract_strided_slice %48 {offsets = [0, 18, 0], sizes = [1, 1, 128], strides = [1, 1, 1]} : vector<1x32x128xbf16> to vector<1x1x128xbf16>
    %86 = vector.shape_cast %85 : vector<1x1x128xbf16> to vector<1x128xbf16>
    %87 = vector.extract_strided_slice %48 {offsets = [0, 19, 0], sizes = [1, 1, 128], strides = [1, 1, 1]} : vector<1x32x128xbf16> to vector<1x1x128xbf16>
    %88 = vector.shape_cast %87 : vector<1x1x128xbf16> to vector<1x128xbf16>
    %89 = vector.extract_strided_slice %48 {offsets = [0, 20, 0], sizes = [1, 1, 128], strides = [1, 1, 1]} : vector<1x32x128xbf16> to vector<1x1x128xbf16>
    %90 = vector.shape_cast %89 : vector<1x1x128xbf16> to vector<1x128xbf16>
    %91 = vector.extract_strided_slice %48 {offsets = [0, 21, 0], sizes = [1, 1, 128], strides = [1, 1, 1]} : vector<1x32x128xbf16> to vector<1x1x128xbf16>
    %92 = vector.shape_cast %91 : vector<1x1x128xbf16> to vector<1x128xbf16>
    %93 = vector.extract_strided_slice %48 {offsets = [0, 22, 0], sizes = [1, 1, 128], strides = [1, 1, 1]} : vector<1x32x128xbf16> to vector<1x1x128xbf16>
    %94 = vector.shape_cast %93 : vector<1x1x128xbf16> to vector<1x128xbf16>
    %95 = vector.extract_strided_slice %48 {offsets = [0, 23, 0], sizes = [1, 1, 128], strides = [1, 1, 1]} : vector<1x32x128xbf16> to vector<1x1x128xbf16>
    %96 = vector.shape_cast %95 : vector<1x1x128xbf16> to vector<1x128xbf16>
    %97 = vector.extract_strided_slice %48 {offsets = [0, 24, 0], sizes = [1, 1, 128], strides = [1, 1, 1]} : vector<1x32x128xbf16> to vector<1x1x128xbf16>
    %98 = vector.shape_cast %97 : vector<1x1x128xbf16> to vector<1x128xbf16>
    %99 = vector.extract_strided_slice %48 {offsets = [0, 25, 0], sizes = [1, 1, 128], strides = [1, 1, 1]} : vector<1x32x128xbf16> to vector<1x1x128xbf16>
    %100 = vector.shape_cast %99 : vector<1x1x128xbf16> to vector<1x128xbf16>
    %101 = vector.extract_strided_slice %48 {offsets = [0, 26, 0], sizes = [1, 1, 128], strides = [1, 1, 1]} : vector<1x32x128xbf16> to vector<1x1x128xbf16>
    %102 = vector.shape_cast %101 : vector<1x1x128xbf16> to vector<1x128xbf16>
    %103 = vector.extract_strided_slice %48 {offsets = [0, 27, 0], sizes = [1, 1, 128], strides = [1, 1, 1]} : vector<1x32x128xbf16> to vector<1x1x128xbf16>
    %104 = vector.shape_cast %103 : vector<1x1x128xbf16> to vector<1x128xbf16>
    %105 = vector.extract_strided_slice %48 {offsets = [0, 28, 0], sizes = [1, 1, 128], strides = [1, 1, 1]} : vector<1x32x128xbf16> to vector<1x1x128xbf16>
    %106 = vector.shape_cast %105 : vector<1x1x128xbf16> to vector<1x128xbf16>
    %107 = vector.extract_strided_slice %48 {offsets = [0, 29, 0], sizes = [1, 1, 128], strides = [1, 1, 1]} : vector<1x32x128xbf16> to vector<1x1x128xbf16>
    %108 = vector.shape_cast %107 : vector<1x1x128xbf16> to vector<1x128xbf16>
    %109 = vector.extract_strided_slice %48 {offsets = [0, 30, 0], sizes = [1, 1, 128], strides = [1, 1, 1]} : vector<1x32x128xbf16> to vector<1x1x128xbf16>
    %110 = vector.shape_cast %109 : vector<1x1x128xbf16> to vector<1x128xbf16>
    %111 = vector.extract_strided_slice %48 {offsets = [0, 31, 0], sizes = [1, 1, 128], strides = [1, 1, 1]} : vector<1x32x128xbf16> to vector<1x1x128xbf16>
    %112 = vector.shape_cast %111 : vector<1x1x128xbf16> to vector<1x128xbf16>
    %113 = tpu.concatenate %50, %52, %54, %56, %58, %60, %62, %64, %66, %68, %70, %72, %74, %76, %78, %80 in 1 : vector<1x128xbf16>, vector<1x128xbf16>, vector<1x128xbf16>, vector<1x128xbf16>, vector<1x128xbf16>, vector<1x128xbf16>, vector<1x128xbf16>, vector<1x128xbf16>, vector<1x128xbf16>, vector<1x128xbf16>, vector<1x128xbf16>, vector<1x128xbf16>, vector<1x128xbf16>, vector<1x128xbf16>, vector<1x128xbf16>, vector<1x128xbf16> -> vector<1x2048xbf16>
    %114 = tpu.concatenate %82, %84, %86, %88, %90, %92, %94, %96, %98, %100, %102, %104, %106, %108, %110, %112 in 1 : vector<1x128xbf16>, vector<1x128xbf16>, vector<1x128xbf16>, vector<1x128xbf16>, vector<1x128xbf16>, vector<1x128xbf16>, vector<1x128xbf16>, vector<1x128xbf16>, vector<1x128xbf16>, vector<1x128xbf16>, vector<1x128xbf16>, vector<1x128xbf16>, vector<1x128xbf16>, vector<1x128xbf16>, vector<1x128xbf16>, vector<1x128xbf16> -> vector<1x2048xbf16>
    %115 = tpu.concatenate %113, %114 in 1 : vector<1x2048xbf16>, vector<1x2048xbf16> -> vector<1x4096xbf16>
    tpu.wait_dma2 semaphore(%arg14 : memref<!tpu.dma_semaphore, #tpu.memory_space<semaphore_mem>>) src(%arg10 : memref<4096x128xbf16, #tpu.memory_space<any>>) dst(%arg13 : memref<4096x128xbf16, #tpu.memory_space<vmem>>)
    %c0_24 = arith.constant 0 : index
    %c0_25 = arith.constant 0 : index
    %116 = vector.load %arg13[%c0_24, %c0_25] : memref<4096x128xbf16, #tpu.memory_space<vmem>>, vector<4096x128xbf16>
    %cst_26 = arith.constant dense<0.000000e+00> : vector<1x128xf32>
    %117 = tpu.matmul %115, %116, %cst_26 {dimension_numbers = #tpu.dot_dimension_numbers<[1], [0], [0], [1], [0, 0, 1, 1], [], []>} : vector<1x4096xbf16>, vector<4096x128xbf16>, vector<1x128xf32> -> vector<1x128xf32>
    %c0_27 = arith.constant 0 : index
    %c0_28 = arith.constant 0 : index
    %118 = vector.load %arg11[%c0_27, %c0_28] : memref<1x128xf32, #tpu.memory_space<vmem>>, vector<1x128xf32>
    %119 = arith.addf %117, %118 : vector<1x128xf32>
    %c0_29 = arith.constant 0 : index
    %c0_30 = arith.constant 0 : index
    %120 = vector.load %arg3[%c0_29, %c0_30] : memref<1x128xf32, #tpu.memory_space<vmem>>, vector<1x128xf32>
    %cst_31 = arith.constant 0.000000e+00 : f32
    %121 = vector.broadcast %cst_31 : f32 to vector<1x128xf32>
    %122 = arith.cmpf ogt, %120, %121 : vector<1x128xf32>
    %123 = arith.extui %122 : vector<1x128xi1> to vector<1x128xi32>
    %124 = arith.sitofp %123 : vector<1x128xi32> to vector<1x128xf32>
    %cst_32 = arith.constant 0.000000e+00 : f32
    %125 = vector.broadcast %cst_32 : f32 to vector<1x128xf32>
    %126 = arith.cmpf ogt, %120, %125 : vector<1x128xf32>
    %cst_33 = arith.constant -1.000000e+30 : f32
    %127 = vector.broadcast %cst_33 : f32 to vector<1x128xf32>
    %128 = arith.select %126, %119, %127 : vector<1x128xi1>, vector<1x128xf32>
    %cst_34 = arith.constant dense<0xFF800000> : vector<1xf32>
    %129 = vector.multi_reduction <maximumf>, %128, %cst_34 [1] : vector<1x128xf32> to vector<1xf32>
    %130 = vector.shape_cast %129 : vector<1xf32> to vector<1x1xf32>
    %131 = vector.broadcast %130 : vector<1x1xf32> to vector<1x128xf32>
    %132 = arith.subf %128, %131 : vector<1x128xf32>
    %133 = math.exp %132 : vector<1x128xf32>
    %134 = arith.mulf %133, %124 : vector<1x128xf32>
    %cst_35 = arith.constant dense<0.000000e+00> : vector<1xf32>
    %135 = vector.multi_reduction <add>, %134, %cst_35 [1] : vector<1x128xf32> to vector<1xf32>
    %136 = vector.shape_cast %135 : vector<1xf32> to vector<1x1xf32>
    %cst_36 = arith.constant 1.000000e-30 : f32
    %137 = vector.broadcast %cst_36 : f32 to vector<1x1xf32>
    %138 = arith.maximumf %136, %137 : vector<1x1xf32>
    %139 = tpu.reciprocal %138 : vector<1x1xf32> -> vector<1x1xf32>
    %140 = vector.broadcast %139 : vector<1x1xf32> to vector<1x128xf32>
    %141 = arith.mulf %134, %140 : vector<1x128xf32>
    %c0_37 = arith.constant 0 : index
    %c0_38 = arith.constant 0 : index
    %142 = vector.load %arg12[%c0_37, %c0_38] : memref<1x128xf32, #tpu.memory_space<vmem>>, vector<1x128xf32>
    tpu.vector_store %arg12[%c0_37, %c0_38], %141 {strides = array<i32>} : memref<1x128xf32, #tpu.memory_space<vmem>>, vector<1x128xf32>,
    return
  }
  func.func @transform_0(%arg0: i32) -> (i32, i32) {
    %c0_i32 = arith.constant 0 : i32
    %c0_i32_0 = arith.constant 0 : i32
    return %arg0, %c0_i32 : i32, i32
  }
  func.func @transform_1(%arg0: i32) -> (i32, i32) {
    %c0_i32 = arith.constant 0 : i32
    %c0_i32_0 = arith.constant 0 : i32
    %c0_i32_1 = arith.constant 0 : i32
    return %c0_i32, %c0_i32_0 : i32, i32
  }
  func.func @transform_2(%arg0: i32) -> (i32, i32) {
    %c0_i32 = arith.constant 0 : i32
    %c0_i32_0 = arith.constant 0 : i32
    return %arg0, %c0_i32 : i32, i32
  }
  func.func @transform_3(%arg0: i32) -> (i32, i32) {
    %c0_i32 = arith.constant 0 : i32
    %c0_i32_0 = arith.constant 0 : i32
    %c0_i32_1 = arith.constant 0 : i32
    return %c0_i32, %c0_i32_0 : i32, i32
  }
  func.func @transform_4(%arg0: i32) -> (i32, i32) {
    %c0_i32 = arith.constant 0 : i32
    %c0_i32_0 = arith.constant 0 : i32
    %c0_i32_1 = arith.constant 0 : i32
    return %c0_i32, %c0_i32_0 : i32, i32
  }
  func.func @transform_5(%arg0: i32) -> (i32, i32) {
    %c0_i32 = arith.constant 0 : i32
    %c0_i32_0 = arith.constant 0 : i32
    %c0_i32_1 = arith.constant 0 : i32
    return %c0_i32, %c0_i32_0 : i32, i32
  }
  func.func @transform_6(%arg0: i32) -> (i32, i32) {
    %c0_i32 = arith.constant 0 : i32
    %c0_i32_0 = arith.constant 0 : i32
    %c0_i32_1 = arith.constant 0 : i32
    return %c0_i32, %c0_i32_0 : i32, i32
  }
  func.func @transform_7(%arg0: i32) -> (i32, i32) {
    %c0_i32 = arith.constant 0 : i32
    %c0_i32_0 = arith.constant 0 : i32
    %c0_i32_1 = arith.constant 0 : i32
    return %c0_i32, %c0_i32_0 : i32, i32
  }
  func.func @transform_8(%arg0: i32) -> (i32, i32) {
    %c0_i32 = arith.constant 0 : i32
    %c0_i32_0 = arith.constant 0 : i32
    %c0_i32_1 = arith.constant 0 : i32
    return %c0_i32, %c0_i32_0 : i32, i32
  }
  func.func @transform_10(%arg0: i32) -> (i32, i32) {
    %c0_i32 = arith.constant 0 : i32
    %c0_i32_0 = arith.constant 0 : i32
    %c0_i32_1 = arith.constant 0 : i32
    return %c0_i32, %c0_i32_0 : i32, i32
  }
  func.func @transform_11(%arg0: i32) -> (i32, i32) {
    %c0_i32 = arith.constant 0 : i32
    %c0_i32_0 = arith.constant 0 : i32
    return %arg0, %c0_i32 : i32, i32
  }
}

</mosaic_0001>

<bundles_post_ra>
// kernel: _play_forward.1
= control target key start
LH: loop header
LB: loop body
LE: loop exit
PB: predicated region body
PF: predicated region fallthrough
CT: control target
= control target key end

     0   :  { %16 = vsyncpa [#allocation5], 0  ;;  %s3260_s0 = inlined_call_operand.vmem [shape: f32[32,128], index: 0, kind: input, shape index: {}]   ;;  %s3261_s1 = inlined_call_operand.vmem [shape: f32[32,1], index: 1, kind: input, shape index: {}]   ;;  %s3262_s2 = inlined_call_operand.vmem [shape: f32[1,128], index: 2, kind: input, shape index: {}]   ;;  %s3263_s3 = inlined_call_operand.hbm [shape: bf16[384,128], index: 3, kind: input, shape index: {}]   ;;  %s3264_s4 = inlined_call_operand.vmem [shape: f32[1,128], index: 4, kind: input, shape index: {}]   ;;  %s3265_s5 = inlined_call_operand.hbm [shape: bf16[384,128], index: 5, kind: input, shape index: {}]   ;;  %s3266_s6 = inlined_call_operand.vmem [shape: f32[1,128], index: 6, kind: input, shape index: {}]   ;;  %s3267_s7 = inlined_call_operand.hbm [shape: bf16[384,128], index: 7, kind: input, shape index: {}]   ;;  %s3268_s8 = inlined_call_operand.vmem [shape: f32[1,128], index: 8, kind: input, shape index: {}]   ;;  %s3269_s9 = inlined_call_operand.hbm [shape: bf16[4096,128], index: 9, kind: input, shape index: {}]   ;;  %s3270_s10 = inlined_call_operand.vmem [shape: f32[1,128], index: 10, kind: input, shape index: {}]   ;;  %s3271_s11 = inlined_call_operand.vmem [shape: f32[1,128], index: 11, kind: output, shape index: {}]  }
   0x1   :  { %17 = vsyncpa [#allocation7], 0  ;;  %s2890_s17 = smov [#allocation6]   ;;  %s2891_s19 = smov [#allocation4]  }
   0x2   :  { %s43_s18 = sshll.u32 %s2890_s17, 4  ;;  %s29_s20 = sshll.u32 %s2891_s19, 4  ;;  %s44_s18 = int_to_ptr.vmem [resolvable:$true] %s43_s18  ;;  %s2958_s20 = int_to_ptr.vmem [resolvable:$true] %s29_s20 }
   0x3   :  { %s2796_s23 = scalar_lea.hbm %s3265_s5, 3072 }
   0x4   :  { %p2797_p0 = scmp.ne.s32.totalorder %s3265_s5, %s2796_s23  ;;  %p2800_p1 = scmp.lt.u32.totalorder %s2796_s23, %s3265_s5 }
   0x6   :  { %p2802_p2 = pnand %p2800_p1, %p2797_p0 }
   0x8   :  { %2805 = shalt.err (!%p2802_p2)
}
   0x9   :  { %s2806_s28 = scalar_lea.vmem %s44_s18, 3072  ;;  %p2811_p4 = scmp.lt.s32.totalorder %s44_s18, %s44_s18 }
   0xa   :  { %p2807_p3 = scmp.ne.s32.totalorder %s44_s18, %s2806_s28  ;;  %p2812_p5 = scmp.lt.s32.totalorder %s2806_s28, %s2806_s28 }
   0xc   :  { %p2813_p6 = por %p2812_p5, %p2811_p4 }
   0xe   :  { %p2814_p7 = pnand %p2813_p6, %p2807_p3 }
  0x10   :  { %2817 = shalt.err (!%p2814_p7)
}
  0x11   :  { %s2892_s29 = smov 64   ;;  %s2893_s30 = smov 4  }
  0x12   :  { %49 = dma.hbm_to_vmem [thread:$0]  %s3265_s5, 3072, %s44_s18, [#allocation7], %s2892_s29, %s2892_s29, %s2893_s30  }
  0x13   :  { %s2818_s16 = scalar_lea.hbm %s3263_s3, 3072 }
  0x14   :  { %p2819_p8 = scmp.ne.s32.totalorder %s3263_s3, %s2818_s16  ;;  %p2822_p9 = scmp.lt.u32.totalorder %s2818_s16, %s3263_s3 }
  0x16   :  { %p2824_p10 = pnand %p2822_p9, %p2819_p8 }
  0x18   :  { %2827 = shalt.err (!%p2824_p10)
}
  0x19   :  { %s2828_s23 = scalar_lea.vmem %s2958_s20, 3072  ;;  %p2833_p12 = scmp.lt.s32.totalorder %s2958_s20, %s2958_s20 }
  0x1a   :  { %p2829_p11 = scmp.ne.s32.totalorder %s2958_s20, %s2828_s23  ;;  %p2834_p13 = scmp.lt.s32.totalorder %s2828_s23, %s2828_s23 }
  0x1c   :  { %p2835_p0 = por %p2834_p13, %p2833_p12 }
  0x1e   :  { %p2836_p1 = pnand %p2835_p0, %p2829_p11 }
  0x20   :  { %2839 = shalt.err (!%p2836_p1)
}
  0x21   :  { %35 = dma.hbm_to_vmem [thread:$0]  %s3263_s3, 3072, %s2958_s20, [#allocation5], %s2892_s29, %s2892_s29, %s2893_s30  }
  0x22   :  { %s2894_s24 = smov [#allocation8]   ;;  %s2840_s28 = scalar_lea.hbm %s3267_s7, 3072 }
  0x23   :  { %s57_s25 = sshll.u32 %s2894_s24, 4  ;;  %p2841_p2 = scmp.ne.s32.totalorder %s3267_s7, %s2840_s28  ;;  %s58_s25 = int_to_ptr.vmem [resolvable:$true] %s57_s25 }
  0x24   :  { %p2844_p3 = scmp.lt.u32.totalorder %s2840_s28, %s3267_s7 }
  0x26   :  { %p2846_p4 = pnand %p2844_p3, %p2841_p2 }
  0x28   :  { %2849 = shalt.err (!%p2846_p4)
}
  0x29   :  { %s2850_s16 = scalar_lea.vmem %s58_s25, 3072  ;;  %p2855_p6 = scmp.lt.s32.totalorder %s58_s25, %s58_s25 }
  0x2a   :  { %p2851_p5 = scmp.ne.s32.totalorder %s58_s25, %s2850_s16  ;;  %p2856_p7 = scmp.lt.s32.totalorder %s2850_s16, %s2850_s16 }
  0x2c   :  { %p2857_p8 = por %p2856_p7, %p2855_p6 }
  0x2e   :  { %p2858_p9 = pnand %p2857_p8, %p2851_p5 }
  0x30   :  { %2861 = shalt.err (!%p2858_p9)
}
  0x31   :  { %63 = dma.hbm_to_vmem [thread:$0]  %s3267_s7, 3072, %s58_s25, [#allocation7], %s2892_s29, %s2892_s29, %s2893_s30  }
  0x32   :  { %2884 = dma.done.wait [#allocation5], 3072  }
  0x33   :  { %2885 = vsyncadd [#allocation5], 4294964224 }
  0x34   :  { %2886 = dma.done.wait [#allocation7], 6144  }
  0x35   :  { %2887 = vsyncadd [#allocation7], 4294961152  ;;  %v2895_v0 = vmov 0   ;;  %v2720_v1 = vld [vmem:[#allocation4 + $0x40] sm:$0xff]   ;;  %v2722_v3 = vld [vmem:[#allocation4 + $0x48] sm:$0xff]   ;;  %v121_v16 = vlaneseq  ;;  %s2862_s3 = scalar_lea.hbm %s3269_s9, 32768 }
  0x36   :  { %2718 = vset.pattern.permute.xlu0 %v2895_v0  ;;  %2719 = vset.pattern.permute.xlu1 %v2895_v0  ;;  %v2721_v2 = vld [vmem:[#allocation4] sm:$0xff]   ;;  %v2724_v5 = vld [vmem:[#allocation4 + $0x8] sm:$0xff]   ;;  %v2725_v6 = vld [vmem:[#allocation4 + $0x50] sm:$0xff]   ;;  %p2863_p10 = scmp.ne.s32.totalorder %s3269_s9, %s2862_s3  ;;  %p2866_p11 = scmp.lt.u32.totalorder %s2862_s3, %s3269_s9 }
  0x37   :  { %2184 = vmatprep.subr.bf16.mxu0 %v2720_v1  ;;  %v2723_v4 = vld [vmem:[#allocation4 + $0x80] sm:$0xff]   ;;  %v2726_v7 = vld [vmem:[#allocation4 + $0x88] sm:$0xff]   ;;  %v2727_v8 = vld [vmem:[#allocation4 + $0x10] sm:$0xff]   ;;  %v3010_v20 = vshrl.u32 %v121_v16, 7 }
  0x38   :  { %2185 = vmatpush3.bf16.msra.mxu0 %v2721_v2  ;;  %2650 = vmatprep.subr.bf16.mxu1 %v2723_v4  ;;  %v2728_v9 = vld [vmem:[#allocation4 + $0x58] sm:$0xff]   ;;  %v2729_v10 = vld [vmem:[#allocation4 + $0x90] sm:$0xff]   ;;  %v2731_v12 = vld [vmem:[#allocation4 + $0x60] sm:$0xff]   ;;  %p2868_p12 = pnand %p2866_p11, %p2863_p10 }
  0x39   :  { %2186 = vmatprep.subr.bf16.mxu0 %v2722_v3  ;;  %2651 = vmatpush3.bf16.msra.mxu1 %v2723_v4  ;;  %v2730_v11 = vld [vmem:[#allocation4 + $0x18] sm:$0xff]   ;;  %v2733_v14 = vld [vmem:[#allocation4 + $0x20] sm:$0xff]   ;;  %v2734_v17 = vld [vmem:[#allocation4 + $0x68] sm:$0xff]   ;;  %vm123_vm0 = vcmp.lt.s32.totalorder %v3010_v20, 1  ;;  %vm132_vm1 = vcmp.lt.s32.totalorder %v3010_v20, 7 }
  0x3a   :  { %2652 = vmatprep.subr.bf16.mxu1 %v2726_v7  ;;  %v2732_v13 = vld [vmem:[#allocation4 + $0x98] sm:$0xff]   ;;  %v2735_v15 = vld [vmem:[#allocation4 + $0xa0] sm:$0xff]   ;;  %v2736_v18 = vld [vmem:[#allocation4 + $0x28] sm:$0xff]  }
  0x3b   :  { %v2738_v19 = vld [vmem:[#allocation4 + $0xa8] sm:$0xff]   ;;  %v2737_v21 = vld [vmem:[#allocation4 + $0x70] sm:$0xff]   ;;  %v2740_v23 = vld [vmem:[#allocation4 + $0x78] sm:$0xff]  }
  0x3c   :  { %2187 = vmatpush3.bf16.msra.mxu0 %v2724_v5  ;;  %v2739_v22 = vld [vmem:[#allocation4 + $0x30] sm:$0xff]   ;;  %v113_v25 = vld [vmem:[%s3260_s0] sm:$0xff]  ;;  %v114_v26 = vld [vmem:[%s3260_s0 + $0x8] sm:$0xff] }
  0x3d   :  { %2188 = vmatprep.subr.bf16.mxu0 %v2725_v6  ;;  %2653 = vmatpush3.bf16.msra.mxu1 %v2726_v7  ;;  %v2741_v24 = vld [vmem:[#allocation4 + $0xb0] sm:$0xff]   ;;  %v116_v27 = vld [vmem:[%s3260_s0 + $0x18] sm:$0xff]  ;;  %v117_v28 = vrot.slane %v113_v25, 7  ;;  %v118_v29 = vrot.slane %v114_v26, 7  ;;  %v128_v30 = vrot.slane %v113_v25, 1  ;;  %v129_v31 = vrot.slane %v114_v26, 1 }
  0x3e   :  { %2654 = vmatprep.subr.bf16.mxu1 %v2729_v10  ;;  %v139_v32 = vpack.c.bf16 %v114_v26, %v113_v25  ;;  %v120_v33 = vrot.slane %v116_v27, 7  ;;  %v115_v34 = vld [vmem:[%s3260_s0 + $0x10] sm:$0xff]  ;;  %v2742_v35 = vld [vmem:[#allocation4 + $0x38] sm:$0xff]   ;;  %v131_v39 = vrot.slane %v116_v27, 1  ;;  %v89_v40 = vld [vmem:[%s3261_s1] sm:$0xff] }
  0x3f   :  { %v2743_v36 = vld [vmem:[#allocation4 + $0xb8] sm:$0xff]   ;;  %v130_v37 = vrot.slane %v115_v34, 1  ;;  %v135_v38 = vsel %vm132_vm1, %v128_v30, %v129_v31  ;;  %v126_v41 = vsel %vm123_vm0, %v117_v28, %v118_v29  ;;  %v2744_v45 = vld [vmem:[#allocation6 + $0x40] sm:$0xff]   ;;  %95 = vperm.xlu0 %2718, %v89_v40   ;;  %v90_v47 = vld [vmem:[%s3261_s1 + $0x8] sm:$0xff]  ;;  %v140_v53 = vpack.c.bf16 %v116_v27, %v115_v34 }
  0x40   :  { %2189 = vmatpush3.bf16.msra.mxu0 %v2727_v8  ;;  %v127_v42 = vsel %vm123_vm0, %v120_v33, %v117_v28  ;;  %v92_v43 = vld [vmem:[%s3261_s1 + $0x18] sm:$0xff]  ;;  %374 = vmatprep.mubr.bf16.mxu0 %v139_v32  ;;  %v136_v50 = vsel %vm132_vm1, %v131_v39, %v128_v30  ;;  %v91_v51 = vld [vmem:[%s3261_s1 + $0x10] sm:$0xff]  ;;  %v2745_v52 = vld [vmem:[#allocation6 + $0x80] sm:$0xff]   ;;  %v119_v54 = vrot.slane %v115_v34, 7 }
  0x41   :  { %2190 = vmatprep.subr.bf16.mxu0 %v2728_v9  ;;  %2655 = vmatpush3.bf16.msra.mxu1 %v2729_v10  ;;  %v134_v44 = vsel %vm132_vm1, %v129_v31, %v130_v37  ;;  %v137_v48 = vpack.c.bf16 %v126_v41, %v127_v42  ;;  %v133_v49 = vsel %vm132_vm1, %v130_v37, %v131_v39  ;;  %v2746_v55 = vld [vmem:[#allocation6] sm:$0xff]   ;;  %v2747_v56 = vld [vmem:[#allocation6 + $0x48] sm:$0xff]   ;;  %v2750_v63 = vld [vmem:[#allocation6 + $0x50] sm:$0xff]  }
  0x42   :  { %2656 = vmatprep.subr.bf16.mxu1 %v2732_v13  ;;  %v141_v46 = vpack.c.bf16 %v134_v44, %v135_v38  ;;  %110 = vperm.xlu1 %2719, %v92_v43   ;;  %v142_v57 = vpack.c.bf16 %v136_v50, %v133_v49  ;;  %v2748_v58 = vld [vmem:[#allocation6 + $0x88] sm:$0xff]   ;;  %v124_v59 = vsel %vm123_vm0, %v119_v54, %v120_v33  ;;  %v2751_v0 = vld [vmem:[#allocation6 + $0x90] sm:$0xff]   ;;  %v2753_v2 = vld [vmem:[#allocation6 + $0x58] sm:$0xff]  }
  0x43   :  { %100 = vperm.xlu0 %2718, %v90_v47   ;;  %v125_v60 = vsel %vm123_vm0, %v118_v29, %v119_v54  ;;  %v2749_v62 = vld [vmem:[#allocation6 + $0x8] sm:$0xff]   ;;  %v2752_v1 = vld [vmem:[#allocation6 + $0x10] sm:$0xff]   ;;  %v2754_v3 = vld [vmem:[#allocation6 + $0x98] sm:$0xff]  }
  0x44   :  { %2191 = vmatpush3.bf16.msra.mxu0 %v2730_v11  ;;  %2666 = vmatprep.mubr.bf16.mxu1 %v141_v46  ;;  %v138_v61 = vpack.c.bf16 %v124_v59, %v125_v60  ;;  %v2755_v4 = vld [vmem:[#allocation6 + $0x18] sm:$0xff]   ;;  %v2756_v5 = vld [vmem:[#allocation6 + $0x60] sm:$0xff]   ;;  %v2759_v8 = vld [vmem:[#allocation6 + $0x68] sm:$0xff]  }
  0x45   :  { %2192 = vmatprep.subr.bf16.mxu0 %v2731_v12  ;;  %2657 = vmatpush3.bf16.msra.mxu1 %v2732_v13  ;;  %v2757_v6 = vld [vmem:[#allocation6 + $0xa0] sm:$0xff]   ;;  %v2760_v9 = vld [vmem:[#allocation6 + $0xa8] sm:$0xff]   ;;  %v2762_v11 = vld [vmem:[#allocation6 + $0x70] sm:$0xff]  }
  0x46   :  { %2658 = vmatprep.subr.bf16.mxu1 %v2735_v15  ;;  %105 = vperm.xlu1 %2719, %v91_v51   ;;  %v2758_v7 = vld [vmem:[#allocation6 + $0x20] sm:$0xff]   ;;  %v2761_v10 = vld [vmem:[#allocation6 + $0x28] sm:$0xff]   ;;  %v2763_v12 = vld [vmem:[#allocation6 + $0xb0] sm:$0xff]  }
  0x47   :  { %v2764_v13 = vld [vmem:[#allocation6 + $0x30] sm:$0xff]   ;;  %v2767_v16 = vld [vmem:[#allocation6 + $0x38] sm:$0xff]  }
  0x48   :  { %2193 = vmatpush3.bf16.msra.mxu0 %v2733_v14  ;;  %v2765_v14 = vld [vmem:[#allocation6 + $0x78] sm:$0xff]  }
  0x49   :  { %2194 = vmatprep.subr.bf16.mxu0 %v2734_v17  ;;  %2659 = vmatpush3.bf16.msra.mxu1 %v2735_v15  ;;  %v2766_v15 = vld [vmem:[#allocation6 + $0xb8] sm:$0xff]   ;;  %v2768_v17 = vld [vmem:[#allocation8 + $0x40] sm:$0xff]  }
  0x4a   :  { %2660 = vmatprep.subr.bf16.mxu1 %v2738_v19 }
  0x4c   :  { %2195 = vmatpush3.bf16.msra.mxu0 %v2736_v18  ;;  %v3054_v18 = vld [vmem:[#allocation8 + $0x80] sm:$0xff]  }
  0x4d   :  { %2196 = vmatprep.subr.bf16.mxu0 %v2737_v21  ;;  %2661 = vmatpush3.bf16.msra.mxu1 %v2738_v19 }
  0x4e   :  { %2662 = vmatprep.subr.bf16.mxu1 %v2741_v24 }
  0x50   :  { %2197 = vmatpush3.bf16.msra.mxu0 %v2739_v22  ;;  %v2107_v22 = vld [vmem:[%s3264_s4] ss:$0 sm:$0xff] }
  0x51   :  { %2198 = vmatprep.subr.bf16.mxu0 %v2740_v23  ;;  %2663 = vmatpush3.bf16.msra.mxu1 %v2741_v24 }
  0x52   :  { %2664 = vmatprep.subr.bf16.mxu1 %v2743_v36 }
  0x54   :  { %2199 = vmatpush3.bf16.msra.mxu0 %v2742_v35 }
  0x55   :  { %2222 = vmatprep.subr.bf16.mxu0 %v2744_v45  ;;  %2665 = vmatpush3.bf16.msra.mxu1 %v2743_v36 }
  0x56   :  { %2670 = vmatprep.subr.bf16.mxu1 %v2745_v52 }
  0x57   :  { %375 = vmatmul.mubr.bf16.vlgmr.msra.gmra.mrb[0].mxu0 %v137_v48 }
  0x58   :  { %382 = vmatprep.mubr.bf16.mxu0 %v140_v53  ;;  %2223 = vmatpush3.bf16.msra.mxu0 %v2746_v55 }
  0x59   :  { %2667 = vmatmul.mubr.bf16.vlgmr.msra.gmra.mrb[0].mxu1 %v142_v57  ;;  %2224 = vmatprep.subr.bf16.mxu0 %v2747_v56 }
  0x5a   :  { %2671 = vmatpush3.bf16.msra.mxu1 %v2745_v52 }
  0x5b   :  { %2672 = vmatprep.subr.bf16.mxu1 %v2748_v58 }
  0x5c   :  { %2225 = vmatpush3.bf16.msra.mxu0 %v2749_v62 }
  0x5d   :  { %2226 = vmatprep.subr.bf16.mxu0 %v2750_v63 }
  0x5e   :  { %2673 = vmatpush3.bf16.msra.mxu1 %v2748_v58 }
  0x5f   :  { %383 = vmatmul.mubr.bf16.gmra.mrb[4].mxu0 %v138_v61  ;;  %2674 = vmatprep.subr.bf16.mxu1 %v2751_v0 }
  0x60   :  { %2227 = vmatpush3.bf16.msra.mxu0 %v2752_v1 }
  0x61   :  { %2228 = vmatprep.subr.bf16.mxu0 %v2753_v2 }
  0x62   :  { %2675 = vmatpush3.bf16.msra.mxu1 %v2751_v0 }
  0x63   :  { %2676 = vmatprep.subr.bf16.mxu1 %v2754_v3 }
  0x64   :  { %2229 = vmatpush3.bf16.msra.mxu0 %v2755_v4 }
  0x65   :  { %2230 = vmatprep.subr.bf16.mxu0 %v2756_v5 }
  0x66   :  { %2677 = vmatpush3.bf16.msra.mxu1 %v2754_v3 }
  0x67   :  { %2678 = vmatprep.subr.bf16.mxu1 %v2757_v6 }
  0x68   :  { %2231 = vmatpush3.bf16.msra.mxu0 %v2758_v7 }
  0x69   :  { %2232 = vmatprep.subr.bf16.mxu0 %v2759_v8  ;;  %v2770_v8 = vld [vmem:[#allocation8] sm:$0xff]  }
  0x6a   :  { %2679 = vmatpush3.bf16.msra.mxu1 %v2757_v6 }
  0x6b   :  { %2680 = vmatprep.subr.bf16.mxu1 %v2760_v9 }
  0x6c   :  { %2233 = vmatpush3.bf16.msra.mxu0 %v2761_v10 }
  0x6d   :  { %2234 = vmatprep.subr.bf16.mxu0 %v2762_v11  ;;  %v2771_v11 = vld [vmem:[#allocation8 + $0x48] sm:$0xff]  }
  0x6e   :  { %2681 = vmatpush3.bf16.msra.mxu1 %v2760_v9 }
  0x6f   :  { %2682 = vmatprep.subr.bf16.mxu1 %v2763_v12 }
  0x70   :  { %2235 = vmatpush3.bf16.msra.mxu0 %v2764_v13  ;;  %v2772_v13 = vld [vmem:[#allocation8 + $0x88] sm:$0xff]  }
  0x71   :  { %2236 = vmatprep.subr.bf16.mxu0 %v2765_v14 }
  0x72   :  { %2683 = vmatpush3.bf16.msra.mxu1 %v2763_v12 }
  0x73   :  { %2684 = vmatprep.subr.bf16.mxu1 %v2766_v15 }
  0x74   :  { %2237 = vmatpush3.bf16.msra.mxu0 %v2767_v16 }
  0x75   :  { %2260 = vmatprep.subr.bf16.mxu0 %v2768_v17 }
  0x76   :  { %2685 = vmatpush3.bf16.msra.mxu1 %v2766_v15 }
  0x77   :  { %2690 = vmatprep.subr.bf16.mxu1 %v3054_v18 }
  0xbe   :  { %v3060_v25 = vpop.permute.xlu0 %95 }
  0xc1   :  { %v3062_v38 = vpop.permute.xlu1 %110 }
  0xc2   :  { %v3064_v40 = vpop.permute.xlu0 %100 }
  0xc5   :  { %v3074_v52 = vpop.permute.xlu1 %105 }
 0x12a   :  { %v2200_v19 = vpop.f32.mrb[0].mxu0 }
 0x12b   :  { %v2201_v21 = vpop.f32.mrb[1].mxu0 }
 0x12c   :  { %v2202_v23 = vadd.f32 %v2201_v21, %v2200_v19  ;;  %v2203_v24 = vpop.f32.mrb[2].mxu0  ;;  %v2668_v27 = vpop.f32.mrb[0].mxu1  ;;  %v2773_v19 = vld [vmem:[#allocation8 + $0x8] sm:$0xff]   ;;  %v2774_v21 = vld [vmem:[#allocation8 + $0x50] sm:$0xff]  }
 0x12d   :  { %v2204_v26 = vpop.f32.mrb[3].mxu0  ;;  %v425_v30 = vpop.f32.mrb[1].mxu1 }
 0x12e   :  { %v2205_v28 = vadd.f32 %v2204_v26, %v2203_v24  ;;  %v377_v29 = vadd.f32 %v2202_v23, %v2107_v22  ;;  %v2669_v31 = vpop.f32.mrb[2].mxu1  ;;  %v2776_v23 = vld [vmem:[#allocation8 + $0x10] sm:$0xff]   ;;  %v2778_v24 = vld [vmem:[#allocation8 + $0x98] sm:$0xff]  }
 0x12f   :  { %v428_v34 = vpop.f32.mrb[3].mxu1  ;;  %v2779_v26 = vld [vmem:[#allocation8 + $0x18] sm:$0xff]  }
 0x130   :  { %v426_v32 = vadd.f32 %v425_v30, %v377_v29  ;;  %v380_v33 = vadd.f32 %v2205_v28, %v2107_v22  ;;  %v2781_v28 = vld [vmem:[#allocation8 + $0xa0] sm:$0xff]   ;;  %v2783_v30 = vld [vmem:[#allocation8 + $0x68] sm:$0xff]  }
 0x131   :  { %v2782_v29 = vld [vmem:[#allocation8 + $0x20] sm:$0xff]  }
 0x132   :  { %v440_v35 = vmax.f32 %v426_v32, 0.0  ;;  %v429_v36 = vadd.f32 %v428_v34, %v380_v33  ;;  %v2206_v37 = vpop.f32.mrb[4].mxu0  ;;  %v2785_v32 = vld [vmem:[#allocation8 + $0x28] sm:$0xff]   ;;  %v2786_v33 = vld [vmem:[#allocation8 + $0x70] sm:$0xff]  }
 0x133   :  { %v2207_v39 = vpop.f32.mrb[5].mxu0  ;;  %v2787_v34 = vld [vmem:[#allocation8 + $0xb0] sm:$0xff]  }
 0x134   :  { %v441_v41 = vmax.f32 %v429_v36, 0.0  ;;  %v2208_v42 = vadd.f32 %v2207_v39, %v2206_v37  ;;  %v2209_v43 = vpop.f32.mrb[6].mxu0  ;;  %v3067_v45 = vmul.f32 %v440_v35, %v3060_v25  ;;  %v2788_v35 = vld [vmem:[#allocation8 + $0x30] sm:$0xff]   ;;  %v2789_v36 = vld [vmem:[#allocation8 + $0x78] sm:$0xff]  }
 0x135   :  { %v2210_v44 = vpop.f32.mrb[7].mxu0  ;;  %v2790_v37 = vld [vmem:[#allocation8 + $0xb8] sm:$0xff]  }
 0x136   :  { %v385_v46 = vadd.f32 %v2208_v42, %v2107_v22  ;;  %v2211_v47 = vadd.f32 %v2210_v44, %v2209_v43  ;;  %v3070_v48 = vmul.f32 %v441_v41, %v3064_v40  ;;  %v456_v60 = vrot.slane %v3067_v45, 1  ;;  %v2791_v39 = vld [vmem:[#allocation8 + $0x38] sm:$0xff]   ;;  %v2132_v44 = vld [vmem:[%s3266_s6] ss:$0 sm:$0xff]  ;;  %s2896_s6 = smov [#allocation2]  }
 0x137   :  { %v448_v62 = vrot.slane %v3067_v45, 7  ;;  %s85_s14 = sshll.u32 %s2896_s6, 4  ;;  %s86_s14 = int_to_ptr.vmem [resolvable:$true] %s85_s14 }
 0x138   :  { %v388_v49 = vadd.f32 %v2211_v47, %v2107_v22  ;;  %v466_v50 = vpack.c.bf16 %v3070_v48, %v3067_v45  ;;  %v434_v51 = vadd.f32 %v2668_v27, %v385_v46  ;;  %v457_v57 = vrot.slane %v3070_v48, 1  ;;  %v2775_v22 = vld [vmem:[#allocation8 + $0x90] sm:$0xff]   ;;  %v2780_v27 = vld [vmem:[#allocation8 + $0x60] sm:$0xff]  }
 0x139   :  { %v449_v58 = vrot.slane %v3070_v48, 7 }
 0x13a   :  { %v437_v53 = vadd.f32 %v2669_v31, %v388_v49  ;;  %701 = vmatprep.mubr.bf16.mxu0 %v466_v50  ;;  %v442_v54 = vmax.f32 %v434_v51, 0.0  ;;  %v462_v2 = vsel %vm132_vm1, %v456_v60, %v457_v57  ;;  %v2784_v31 = vld [vmem:[#allocation8 + $0xa8] sm:$0xff]  }
 0x13b   :  { %v454_v4 = vsel %vm123_vm0, %v448_v62, %v449_v58 }
 0x13c   :  { %v443_v55 = vmax.f32 %v437_v53, 0.0  ;;  %v3077_v56 = vmul.f32 %v442_v54, %v3074_v52 }
 0x13e   :  { %v3082_v59 = vmul.f32 %v443_v55, %v3062_v38  ;;  %v458_v61 = vrot.slane %v3077_v56, 1  ;;  %v450_v14 = vrot.slane %v3077_v56, 7 }
 0x140   :  { %v451_v63 = vrot.slane %v3082_v59, 7  ;;  %v459_v0 = vrot.slane %v3082_v59, 1  ;;  %v461_v1 = vsel %vm132_vm1, %v457_v57, %v458_v61  ;;  %v467_v12 = vpack.c.bf16 %v3082_v59, %v3077_v56 }
 0x141   :  { %v468_v3 = vpack.c.bf16 %v461_v1, %v462_v2  ;;  %v453_v16 = vsel %vm123_vm0, %v449_v58, %v450_v14 }
 0x142   :  { %v455_v5 = vsel %vm123_vm0, %v451_v63, %v448_v62  ;;  %v460_v6 = vsel %vm132_vm1, %v458_v61, %v459_v0  ;;  %v463_v7 = vsel %vm132_vm1, %v459_v0, %v456_v60  ;;  %v452_v15 = vsel %vm123_vm0, %v450_v14, %v451_v63 }
 0x143   :  { %2686 = vmatprep.mubr.bf16.mxu1 %v468_v3  ;;  %v464_v9 = vpack.c.bf16 %v454_v4, %v455_v5  ;;  %v469_v10 = vpack.c.bf16 %v463_v7, %v460_v6  ;;  %v465_v17 = vpack.c.bf16 %v452_v15, %v453_v16 }
 0x145   :  { %702 = vmatmul.mubr.bf16.vlgmr.msra.gmra.mrb[8].mxu0 %v464_v9  ;;  %2687 = vmatmul.mubr.bf16.vlgmr.msra.gmra.mrb[4].mxu1 %v469_v10 }
 0x146   :  { %709 = vmatprep.mubr.bf16.mxu0 %v467_v12  ;;  %2261 = vmatpush3.bf16.msra.mxu0 %v2770_v8 }
 0x147   :  { %2691 = vmatpush3.bf16.msra.mxu1 %v3054_v18  ;;  %2262 = vmatprep.subr.bf16.mxu0 %v2771_v11  ;;  %v2777_v18 = vld [vmem:[#allocation8 + $0x58] sm:$0xff]  }
 0x148   :  { %2692 = vmatprep.subr.bf16.mxu1 %v2772_v13 }
 0x14a   :  { %2263 = vmatpush3.bf16.msra.mxu0 %v2773_v19 }
 0x14b   :  { %2693 = vmatpush3.bf16.msra.mxu1 %v2772_v13  ;;  %2264 = vmatprep.subr.bf16.mxu0 %v2774_v21 }
 0x14c   :  { %2694 = vmatprep.subr.bf16.mxu1 %v2775_v22 }
 0x14d   :  { %710 = vmatmul.mubr.bf16.gmra.mrb[12].mxu0 %v465_v17 }
 0x14e   :  { %2265 = vmatpush3.bf16.msra.mxu0 %v2776_v23 }
 0x14f   :  { %2695 = vmatpush3.bf16.msra.mxu1 %v2775_v22  ;;  %2266 = vmatprep.subr.bf16.mxu0 %v2777_v18 }
 0x150   :  { %2696 = vmatprep.subr.bf16.mxu1 %v2778_v24 }
 0x152   :  { %2267 = vmatpush3.bf16.msra.mxu0 %v2779_v26 }
 0x153   :  { %2697 = vmatpush3.bf16.msra.mxu1 %v2778_v24  ;;  %2268 = vmatprep.subr.bf16.mxu0 %v2780_v27 }
 0x154   :  { %2698 = vmatprep.subr.bf16.mxu1 %v2781_v28 }
 0x156   :  { %2269 = vmatpush3.bf16.msra.mxu0 %v2782_v29 }
 0x157   :  { %2699 = vmatpush3.bf16.msra.mxu1 %v2781_v28  ;;  %2270 = vmatprep.subr.bf16.mxu0 %v2783_v30 }
 0x158   :  { %2700 = vmatprep.subr.bf16.mxu1 %v2784_v31 }
 0x15a   :  { %2271 = vmatpush3.bf16.msra.mxu0 %v2785_v32 }
 0x15b   :  { %2701 = vmatpush3.bf16.msra.mxu1 %v2784_v31  ;;  %2272 = vmatprep.subr.bf16.mxu0 %v2786_v33 }
 0x15c   :  { %2702 = vmatprep.subr.bf16.mxu1 %v2787_v34 }
 0x15e   :  { %2273 = vmatpush3.bf16.msra.mxu0 %v2788_v35 }
 0x15f   :  { %2703 = vmatpush3.bf16.msra.mxu1 %v2787_v34  ;;  %2274 = vmatprep.subr.bf16.mxu0 %v2789_v36 }
 0x160   :  { %2704 = vmatprep.subr.bf16.mxu1 %v2790_v37 }
 0x162   :  { %2275 = vmatpush3.bf16.msra.mxu0 %v2791_v39 }
 0x163   :  { %2705 = vmatpush3.bf16.msra.mxu1 %v2790_v37 }
 0x218   :  { %v2238_v41 = vpop.f32.mrb[8].mxu0  ;;  %v2688_v42 = vpop.f32.mrb[4].mxu1 }
 0x219   :  { %v2239_v43 = vpop.f32.mrb[9].mxu0  ;;  %v752_v46 = vpop.f32.mrb[5].mxu1 }
 0x21a   :  { %v2240_v47 = vadd.f32 %v2239_v43, %v2238_v41  ;;  %v2241_v49 = vpop.f32.mrb[10].mxu0  ;;  %v2689_v50 = vpop.f32.mrb[6].mxu1 }
 0x21b   :  { %v2242_v51 = vpop.f32.mrb[11].mxu0  ;;  %v755_v53 = vpop.f32.mrb[7].mxu1 }
 0x21c   :  { %v704_v54 = vadd.f32 %v2240_v47, %v2132_v44  ;;  %v2243_v55 = vadd.f32 %v2242_v51, %v2241_v49 }
 0x21e   :  { %v753_v57 = vadd.f32 %v752_v46, %v704_v54  ;;  %v707_v58 = vadd.f32 %v2243_v55, %v2132_v44 }
 0x220   :  { %v767_v60 = vmax.f32 %v753_v57, 0.0  ;;  %v756_v61 = vadd.f32 %v755_v53, %v707_v58  ;;  %v2244_v62 = vpop.f32.mrb[12].mxu0 }
 0x221   :  { %v2245_v63 = vpop.f32.mrb[13].mxu0 }
 0x222   :  { %v771_v0 = vmul.f32 %v767_v60, %v3060_v25  ;;  %v768_v1 = vmax.f32 %v756_v61, 0.0  ;;  %v2246_v2 = vadd.f32 %v2245_v63, %v2244_v62  ;;  %v2247_v3 = vpop.f32.mrb[14].mxu0 }
 0x223   :  { %v2248_v4 = vpop.f32.mrb[15].mxu0 }
 0x224   :  { %v772_v5 = vmul.f32 %v768_v1, %v3064_v40  ;;  %v712_v6 = vadd.f32 %v2246_v2, %v2132_v44  ;;  %v775_v7 = vrot.slane %v771_v0, 7  ;;  %v783_v8 = vrot.slane %v771_v0, 1 }
 0x225   :  { %v2249_v9 = vadd.f32 %v2248_v4, %v2247_v3 }
 0x226   :  { %v776_v10 = vrot.slane %v772_v5, 7  ;;  %v784_v11 = vrot.slane %v772_v5, 1  ;;  %v761_v12 = vadd.f32 %v2688_v42, %v712_v6  ;;  %v793_v13 = vpack.c.bf16 %v772_v5, %v771_v0 }
 0x227   :  { %v715_v14 = vadd.f32 %v2249_v9, %v2132_v44 }
 0x228   :  { %v781_v15 = vsel %vm123_vm0, %v775_v7, %v776_v10  ;;  %v769_v16 = vmax.f32 %v761_v12, 0.0  ;;  %1028 = vmatprep.mubr.bf16.mxu0 %v793_v13  ;;  %v789_v17 = vsel %vm132_vm1, %v783_v8, %v784_v11 }
 0x229   :  { %v764_v19 = vadd.f32 %v2689_v50, %v715_v14 }
 0x22a   :  { %v773_v21 = vmul.f32 %v769_v16, %v3074_v52 }
 0x22b   :  { %v770_v22 = vmax.f32 %v764_v19, 0.0 }
 0x22c   :  { %v785_v23 = vrot.slane %v773_v21, 1  ;;  %v777_v18 = vrot.slane %v773_v21, 7 }
 0x22d   :  { %v774_v24 = vmul.f32 %v770_v22, %v3062_v38 }
 0x22e   :  { %v788_v26 = vsel %vm132_vm1, %v784_v11, %v785_v23  ;;  %v780_v27 = vsel %vm123_vm0, %v776_v10, %v777_v18 }
 0x22f   :  { %v778_v28 = vrot.slane %v774_v24, 7  ;;  %v786_v29 = vrot.slane %v774_v24, 1  ;;  %v795_v30 = vpack.c.bf16 %v788_v26, %v789_v17  ;;  %v794_v31 = vpack.c.bf16 %v774_v24, %v773_v21 }
 0x231   :  { %2706 = vmatprep.mubr.bf16.mxu1 %v795_v30  ;;  %v782_v32 = vsel %vm123_vm0, %v778_v28, %v775_v7  ;;  %v787_v33 = vsel %vm132_vm1, %v785_v23, %v786_v29  ;;  %v790_v34 = vsel %vm132_vm1, %v786_v29, %v783_v8  ;;  %v779_v35 = vsel %vm123_vm0, %v777_v18, %v778_v28 }
 0x232   :  { %v791_v36 = vpack.c.bf16 %v781_v15, %v782_v32  ;;  %v796_v37 = vpack.c.bf16 %v790_v34, %v787_v33  ;;  %v792_v39 = vpack.c.bf16 %v779_v35, %v780_v27 }
 0x234   :  { %1029 = vmatmul.mubr.bf16.vlgmr.msra.gmra.mrb[16].mxu0 %v791_v36  ;;  %2707 = vmatmul.mubr.bf16.vlgmr.msra.gmra.mrb[8].mxu1 %v796_v37 }
 0x235   :  { %1036 = vmatprep.mubr.bf16.mxu0 %v794_v31 }
 0x23c   :  { %1037 = vmatmul.mubr.bf16.gmra.mrb[20].mxu0 %v792_v39 }
 0x23d   :  { %2871 = shalt.err (!%p2868_p12)  }
 0x23e   :  { %s2872_s17 = scalar_lea.vmem %s86_s14, 32768  ;;  %p2877_p0 = scmp.lt.s32.totalorder %s86_s14, %s86_s14 }
 0x23f   :  { %p2873_p13 = scmp.ne.s32.totalorder %s86_s14, %s2872_s17  ;;  %p2878_p1 = scmp.lt.s32.totalorder %s2872_s17, %s2872_s17 }
 0x241   :  { %p2879_p2 = por %p2878_p1, %p2877_p0 }
 0x243   :  { %p2880_p3 = pnand %p2879_p2, %p2873_p13 }
 0x245   :  { %2883 = shalt.err (!%p2880_p3)  }
 0x246   :  { %88 = dma.hbm_to_vmem [thread:$0]  %s3269_s9, 32768, %s86_s14, [#allocation3]  ;;  %v2157_v43 = vld [vmem:[%s3268_s8] ss:$0 sm:$0xff] }
 0x307   :  { %v2276_v20 = vpop.f32.mrb[16].mxu0  ;;  %v2708_v41 = vpop.f32.mrb[8].mxu1 }
 0x308   :  { %v2277_v42 = vpop.f32.mrb[17].mxu0  ;;  %v1079_v44 = vpop.f32.mrb[9].mxu1 }
 0x309   :  { %v2278_v46 = vadd.f32 %v2277_v42, %v2276_v20  ;;  %v2279_v47 = vpop.f32.mrb[18].mxu0  ;;  %v2709_v49 = vpop.f32.mrb[10].mxu1 }
 0x30a   :  { %v2280_v50 = vpop.f32.mrb[19].mxu0  ;;  %v1082_v51 = vpop.f32.mrb[11].mxu1 }
 0x30b   :  { %v1031_v53 = vadd.f32 %v2278_v46, %v2157_v43  ;;  %v2281_v54 = vadd.f32 %v2280_v50, %v2279_v47 }
 0x30d   :  { %v1080_v55 = vadd.f32 %v1079_v44, %v1031_v53  ;;  %v1034_v57 = vadd.f32 %v2281_v54, %v2157_v43 }
 0x30f   :  { %v1094_v58 = vadd.f32 %v1080_v55, %v3067_v45  ;;  %v1083_v60 = vadd.f32 %v1082_v51, %v1034_v57  ;;  %v2282_v61 = vpop.f32.mrb[20].mxu0 }
 0x310   :  { %v2283_v62 = vpop.f32.mrb[21].mxu0 }
 0x311   :  { %v1098_v63 = vmax.f32 %v1094_v58, 0.0  ;;  %v1095_v0 = vadd.f32 %v1083_v60, %v3070_v48  ;;  %v2284_v1 = vadd.f32 %v2283_v62, %v2282_v61  ;;  %v2285_v2 = vpop.f32.mrb[22].mxu0 }
 0x312   :  { %v2286_v3 = vpop.f32.mrb[23].mxu0 }
 0x313   :  { %v1099_v4 = vmax.f32 %v1095_v0, 0.0  ;;  %v1039_v5 = vadd.f32 %v2284_v1, %v2157_v43  ;;  %v2287_v6 = vadd.f32 %v2286_v3, %v2285_v2  ;;  %v1102_v7 = vmul.f32 %v1098_v63, %v3060_v25 }
 0x315   :  { %v1103_v8 = vmul.f32 %v1099_v4, %v3064_v40  ;;  %v1088_v9 = vadd.f32 %v2708_v41, %v1039_v5  ;;  %v1042_v10 = vadd.f32 %v2287_v6, %v2157_v43 }
 0x317   :  { %v3151_v11 = vpack.c.bf16 %v1103_v8, %v1102_v7  ;;  %v1091_v45 = vadd.f32 %v2709_v49, %v1042_v10  ;;  %v1096_v12 = vadd.f32 %v1088_v9, %v3077_v56 }
 0x319   :  { %v3155_v13 = vshrl.u32 %v3151_v11, 16  ;;  %v1113_v48 = vrot.slane %v3151_v11, 1  ;;  %v1117_v14 = vrot.slane %v3151_v11, 2  ;;  %v1121_v15 = vrot.slane %v3151_v11, 3 }
 0x31a   :  { %v1125_v25 = vrot.slane %v3151_v11, 4  ;;  %v1129_v40 = vrot.slane %v3151_v11, 5  ;;  %v1133_v16 = vrot.slane %v3151_v11, 6  ;;  %v1137_v17 = vrot.slane %v3151_v11, 7 }
 0x31b   :  { %v1115_v19 = vrot.slane %v3155_v13, 1  ;;  %v1119_v56 = vrot.slane %v3155_v13, 2  ;;  %v1123_v21 = vrot.slane %v3155_v13, 3  ;;  %v1127_v22 = vrot.slane %v3155_v13, 4 }
 0x31c   :  { %v1131_v23 = vrot.slane %v3155_v13, 5  ;;  %v1135_v18 = vrot.slane %v3155_v13, 6  ;;  %v1139_v24 = vrot.slane %v3155_v13, 7  ;;  %v1100_v26 = vmax.f32 %v1096_v12, 0.0 }
 0x31d   :  { %v1097_v27 = vadd.f32 %v1091_v45, %v3082_v59 }
 0x31e   :  { %v1104_v29 = vmul.f32 %v1100_v26, %v3074_v52 }
 0x31f   :  { %v1101_v28 = vmax.f32 %v1097_v27, 0.0 }
 0x321   :  { %v1105_v30 = vmul.f32 %v1101_v28, %v3062_v38 }
 0x323   :  { %v3174_v31 = vpack.c.bf16 %v1105_v30, %v1104_v29 }
 0x325   :  { %v3177_v32 = vshrl.u32 %v3174_v31, 16  ;;  %v1146_v33 = vrot.slane %v3174_v31, 1  ;;  %v1150_v34 = vrot.slane %v3174_v31, 2  ;;  %v1154_v35 = vrot.slane %v3174_v31, 3 }
 0x326   :  { %v1158_v36 = vrot.slane %v3174_v31, 4  ;;  %v1162_v59 = vrot.slane %v3174_v31, 5  ;;  %v1166_v37 = vrot.slane %v3174_v31, 6  ;;  %v1170_v52 = vrot.slane %v3174_v31, 7 }
 0x327   :  { %v1148_v38 = vrot.slane %v3177_v32, 1  ;;  %v1152_v39 = vrot.slane %v3177_v32, 2  ;;  %v1156_v20 = vrot.slane %v3177_v32, 3  ;;  %v1160_v41 = vrot.slane %v3177_v32, 4 }
 0x328   :  { %v1164_v42 = vrot.slane %v3177_v32, 5  ;;  %v1168_v43 = vrot.slane %v3177_v32, 6  ;;  %v1172_v44 = vrot.slane %v3177_v32, 7 }
 0x329   :  { %2888 = dma.done.wait [#allocation3], 32768 }
 0x32a   :  { %2889 = vsyncadd [#allocation3], 4294934528  ;;  %1467 = vmatprep.mubr.bf16.mxu0 %v3155_v13  ;;  %1507 = vmatprep.mubr.bf16.mxu1 %v1115_v19  ;;  %v1186_v46 = vld [vmem:[#allocation2 + $0x40] sm:$0xff]  ;;  %v1187_v51 = vld [vmem:[#allocation2 + $0x48] sm:$0xff]  ;;  %vm2080_vm3 = vcmask 1040384  }
 0x32b   :  { %v1202_v47 = vld [vmem:[#allocation2 + $0xc0] sm:$0xff]  ;;  %2298 = vmatprep.subr.bf16.mxu0 %v1186_v46  ;;  %v1203_v53 = vld [vmem:[#allocation2 + $0xc8] sm:$0xff]  ;;  %v1188_v57 = vld [vmem:[#allocation2 + $0x50] sm:$0xff] }
 0x32c   :  { %v1178_v49 = vld [vmem:[#allocation2] sm:$0xff]  ;;  %2320 = vmatprep.subr.bf16.mxu1 %v1202_v47  ;;  %v1179_v54 = vld [vmem:[#allocation2 + $0x8] sm:$0xff]  ;;  %v1204_v58 = vld [vmem:[#allocation2 + $0xd0] sm:$0xff] }
 0x32d   :  { %v1194_v50 = vld [vmem:[#allocation2 + $0x80] sm:$0xff]  ;;  %2299 = vmatpush3.bf16.msra.mxu0 %v1178_v49  ;;  %v1195_v55 = vld [vmem:[#allocation2 + $0x88] sm:$0xff]  ;;  %v1180_v60 = vld [vmem:[#allocation2 + $0x10] sm:$0xff] }
 0x32e   :  { %2321 = vmatpush3.bf16.msra.mxu1 %v1194_v50  ;;  %2300 = vmatprep.subr.bf16.mxu0 %v1187_v51  ;;  %v1196_v61 = vld [vmem:[#allocation2 + $0x90] sm:$0xff]  ;;  %v1189_v62 = vld [vmem:[#allocation2 + $0x58] sm:$0xff]  ;;  %v1190_v2 = vld [vmem:[#allocation2 + $0x60] sm:$0xff] }
 0x32f   :  { %2322 = vmatprep.subr.bf16.mxu1 %v1203_v53  ;;  %v1205_v63 = vld [vmem:[#allocation2 + $0xd8] sm:$0xff]  ;;  %v1206_v3 = vld [vmem:[#allocation2 + $0xe0] sm:$0xff]  ;;  %v1191_v6 = vld [vmem:[#allocation2 + $0x68] sm:$0xff] }
 0x330   :  { %v1181_v0 = vld [vmem:[#allocation2 + $0x18] sm:$0xff]  ;;  %v1182_v4 = vld [vmem:[#allocation2 + $0x20] sm:$0xff]  ;;  %v1207_v7 = vld [vmem:[#allocation2 + $0xe8] sm:$0xff] }
 0x331   :  { %2301 = vmatpush3.bf16.msra.mxu0 %v1179_v54  ;;  %v1197_v1 = vld [vmem:[#allocation2 + $0x98] sm:$0xff]  ;;  %v1198_v5 = vld [vmem:[#allocation2 + $0xa0] sm:$0xff]  ;;  %v1183_v8 = vld [vmem:[#allocation2 + $0x28] sm:$0xff] }
 0x332   :  { %2323 = vmatpush3.bf16.msra.mxu1 %v1195_v55  ;;  %2302 = vmatprep.subr.bf16.mxu0 %v1188_v57  ;;  %v1199_v9 = vld [vmem:[#allocation2 + $0xa8] sm:$0xff]  ;;  %v1192_v10 = vld [vmem:[#allocation2 + $0x70] sm:$0xff]  ;;  %v1193_v26 = vld [vmem:[#allocation2 + $0x78] sm:$0xff] }
 0x333   :  { %2324 = vmatprep.subr.bf16.mxu1 %v1204_v58  ;;  %v1208_v45 = vld [vmem:[#allocation2 + $0xf0] sm:$0xff]  ;;  %v1209_v27 = vld [vmem:[#allocation2 + $0xf8] sm:$0xff]  ;;  %v1218_v30 = vld [vmem:[#allocation2 + $0x140] sm:$0xff] }
 0x334   :  { %v1184_v12 = vld [vmem:[#allocation2 + $0x30] sm:$0xff]  ;;  %v1185_v28 = vld [vmem:[#allocation2 + $0x38] sm:$0xff]  ;;  %v1234_v46 = vld [vmem:[#allocation2 + $0x1c0] sm:$0xff] }
 0x335   :  { %2303 = vmatpush3.bf16.msra.mxu0 %v1180_v60  ;;  %v1200_v19 = vld [vmem:[#allocation2 + $0xb0] sm:$0xff]  ;;  %v1201_v29 = vld [vmem:[#allocation2 + $0xb8] sm:$0xff]  ;;  %v1210_v47 = vld [vmem:[#allocation2 + $0x100] sm:$0xff] }
 0x336   :  { %2325 = vmatpush3.bf16.msra.mxu1 %v1196_v61  ;;  %2304 = vmatprep.subr.bf16.mxu0 %v1189_v62  ;;  %v1226_v49 = vld [vmem:[#allocation2 + $0x180] sm:$0xff]  ;;  %v1219_v50 = vld [vmem:[#allocation2 + $0x148] sm:$0xff]  ;;  %v1220_v55 = vld [vmem:[#allocation2 + $0x150] sm:$0xff] }
 0x337   :  { %2326 = vmatprep.subr.bf16.mxu1 %v1205_v63  ;;  %v1235_v51 = vld [vmem:[#allocation2 + $0x1c8] sm:$0xff]  ;;  %v1236_v57 = vld [vmem:[#allocation2 + $0x1d0] sm:$0xff]  ;;  %v1221_v60 = vld [vmem:[#allocation2 + $0x158] sm:$0xff] }
 0x338   :  { %v1211_v53 = vld [vmem:[#allocation2 + $0x108] sm:$0xff]  ;;  %v1212_v58 = vld [vmem:[#allocation2 + $0x110] sm:$0xff]  ;;  %v1237_v61 = vld [vmem:[#allocation2 + $0x1d8] sm:$0xff] }
 0x339   :  { %2305 = vmatpush3.bf16.msra.mxu0 %v1181_v0  ;;  %v1227_v54 = vld [vmem:[#allocation2 + $0x188] sm:$0xff]  ;;  %v1213_v62 = vld [vmem:[#allocation2 + $0x118] sm:$0xff]  ;;  %v1222_v0 = vld [vmem:[#allocation2 + $0x160] sm:$0xff] }
 0x33a   :  { %2327 = vmatpush3.bf16.msra.mxu1 %v1197_v1  ;;  %2306 = vmatprep.subr.bf16.mxu0 %v1190_v2  ;;  %v1229_v63 = vld [vmem:[#allocation2 + $0x198] sm:$0xff]  ;;  %v1238_v1 = vld [vmem:[#allocation2 + $0x1e0] sm:$0xff]  ;;  %v1223_v2 = vld [vmem:[#allocation2 + $0x168] sm:$0xff] }
 0x33b   :  { %2328 = vmatprep.subr.bf16.mxu1 %v1206_v3  ;;  %v1239_v3 = vld [vmem:[#allocation2 + $0x1e8] sm:$0xff]  ;;  %v1278_v13 = vld [vmem:[#allocation2 + $0x320] sm:$0xff] }
 0x33d   :  { %2307 = vmatpush3.bf16.msra.mxu0 %v1182_v4  ;;  %v1215_v4 = vld [vmem:[#allocation2 + $0x128] sm:$0xff] }
 0x33e   :  { %2329 = vmatpush3.bf16.msra.mxu1 %v1198_v5  ;;  %2308 = vmatprep.subr.bf16.mxu0 %v1191_v6  ;;  %v1231_v5 = vld [vmem:[#allocation2 + $0x1a8] sm:$0xff]  ;;  %v1224_v6 = vld [vmem:[#allocation2 + $0x170] sm:$0xff] }
 0x33f   :  { %2330 = vmatprep.subr.bf16.mxu1 %v1207_v7  ;;  %v1240_v7 = vld [vmem:[#allocation2 + $0x1f0] sm:$0xff] }
 0x341   :  { %2309 = vmatpush3.bf16.msra.mxu0 %v1183_v8  ;;  %v1216_v8 = vld [vmem:[#allocation2 + $0x130] sm:$0xff] }
 0x342   :  { %2331 = vmatpush3.bf16.msra.mxu1 %v1199_v9  ;;  %2310 = vmatprep.subr.bf16.mxu0 %v1192_v10  ;;  %v1232_v9 = vld [vmem:[#allocation2 + $0x1b0] sm:$0xff]  ;;  %v1225_v10 = vld [vmem:[#allocation2 + $0x178] sm:$0xff] }
 0x343   :  { %2332 = vmatprep.subr.bf16.mxu1 %v1208_v45  ;;  %v1241_v45 = vld [vmem:[#allocation2 + $0x1f8] sm:$0xff] }
 0x345   :  { %2311 = vmatpush3.bf16.msra.mxu0 %v1184_v12  ;;  %v1217_v12 = vld [vmem:[#allocation2 + $0x138] sm:$0xff] }
 0x346   :  { %2333 = vmatpush3.bf16.msra.mxu1 %v1200_v19  ;;  %2312 = vmatprep.subr.bf16.mxu0 %v1193_v26  ;;  %v1233_v19 = vld [vmem:[#allocation2 + $0x1b8] sm:$0xff]  ;;  %v1250_v26 = vld [vmem:[#allocation2 + $0x240] sm:$0xff] }
 0x347   :  { %2334 = vmatprep.subr.bf16.mxu1 %v1209_v27  ;;  %v1266_v27 = vld [vmem:[#allocation2 + $0x2c0] sm:$0xff] }
 0x349   :  { %2313 = vmatpush3.bf16.msra.mxu0 %v1185_v28  ;;  %v1242_v28 = vld [vmem:[#allocation2 + $0x200] sm:$0xff] }
 0x34a   :  { %2335 = vmatpush3.bf16.msra.mxu1 %v1201_v29  ;;  %2342 = vmatprep.subr.bf16.mxu0 %v1218_v30  ;;  %v1258_v29 = vld [vmem:[#allocation2 + $0x280] sm:$0xff]  ;;  %v1251_v30 = vld [vmem:[#allocation2 + $0x248] sm:$0xff] }
 0x34b   :  { %2364 = vmatprep.subr.bf16.mxu1 %v1234_v46  ;;  %v1267_v46 = vld [vmem:[#allocation2 + $0x2c8] sm:$0xff] }
 0x34c   :  { %1468 = vmatmul.mubr.bf16.vlgmr.msra.gmra.mrb[24].mxu0 %v3151_v11  ;;  %v1324_v11 = vld [vmem:[#allocation2 + $0x490] sm:$0xff] }
 0x34d   :  { %1508 = vmatmul.mubr.bf16.vlgmr.msra.gmra.mrb[12].mxu1 %v1113_v48  ;;  %2343 = vmatpush3.bf16.msra.mxu0 %v1210_v47  ;;  %v1228_v48 = vld [vmem:[#allocation2 + $0x190] sm:$0xff]  ;;  %v1243_v47 = vld [vmem:[#allocation2 + $0x208] sm:$0xff] }
 0x34e   :  { %2365 = vmatpush3.bf16.msra.mxu1 %v1226_v49  ;;  %2344 = vmatprep.subr.bf16.mxu0 %v1219_v50  ;;  %v1259_v49 = vld [vmem:[#allocation2 + $0x288] sm:$0xff]  ;;  %v1252_v50 = vld [vmem:[#allocation2 + $0x250] sm:$0xff] }
 0x34f   :  { %2366 = vmatprep.subr.bf16.mxu1 %v1235_v51  ;;  %1547 = vmatprep.mubr.bf16.mxu0 %v1119_v56  ;;  %v1214_v56 = vld [vmem:[#allocation2 + $0x120] sm:$0xff]  ;;  %v1268_v51 = vld [vmem:[#allocation2 + $0x2d0] sm:$0xff] }
 0x350   :  { %1587 = vmatprep.mubr.bf16.mxu1 %v1123_v21  ;;  %v1230_v21 = vld [vmem:[#allocation2 + $0x1a0] sm:$0xff] }
 0x351   :  { %2345 = vmatpush3.bf16.msra.mxu0 %v1211_v53  ;;  %v1253_v53 = vld [vmem:[#allocation2 + $0x258] sm:$0xff] }
 0x352   :  { %2367 = vmatpush3.bf16.msra.mxu1 %v1227_v54  ;;  %2346 = vmatprep.subr.bf16.mxu0 %v1220_v55  ;;  %v1269_v54 = vld [vmem:[#allocation2 + $0x2d8] sm:$0xff] }
 0x353   :  { %2368 = vmatprep.subr.bf16.mxu1 %v1236_v57  ;;  %v1245_v55 = vld [vmem:[#allocation2 + $0x218] sm:$0xff] }
 0x354   :  { %v1261_v57 = vld [vmem:[#allocation2 + $0x298] sm:$0xff] }
 0x355   :  { %2347 = vmatpush3.bf16.msra.mxu0 %v1212_v58  ;;  %v1254_v58 = vld [vmem:[#allocation2 + $0x260] sm:$0xff] }
 0x356   :  { %2369 = vmatpush3.bf16.msra.mxu1 %v1228_v48  ;;  %2348 = vmatprep.subr.bf16.mxu0 %v1221_v60  ;;  %v1270_v48 = vld [vmem:[#allocation2 + $0x2e0] sm:$0xff]  ;;  %v1255_v60 = vld [vmem:[#allocation2 + $0x268] sm:$0xff] }
 0x357   :  { %2370 = vmatprep.subr.bf16.mxu1 %v1237_v61  ;;  %v1271_v61 = vld [vmem:[#allocation2 + $0x2e8] sm:$0xff] }
 0x359   :  { %2349 = vmatpush3.bf16.msra.mxu0 %v1213_v62  ;;  %v1247_v62 = vld [vmem:[#allocation2 + $0x228] sm:$0xff] }
 0x35a   :  { %2371 = vmatpush3.bf16.msra.mxu1 %v1229_v63  ;;  %2350 = vmatprep.subr.bf16.mxu0 %v1222_v0  ;;  %v1263_v63 = vld [vmem:[#allocation2 + $0x2a8] sm:$0xff]  ;;  %v1256_v0 = vld [vmem:[#allocation2 + $0x270] sm:$0xff] }
 0x35b   :  { %2372 = vmatprep.subr.bf16.mxu1 %v1238_v1  ;;  %v1272_v1 = vld [vmem:[#allocation2 + $0x2f0] sm:$0xff] }
 0x35d   :  { %2351 = vmatpush3.bf16.msra.mxu0 %v1214_v56  ;;  %v1248_v56 = vld [vmem:[#allocation2 + $0x230] sm:$0xff] }
 0x35e   :  { %2373 = vmatpush3.bf16.msra.mxu1 %v1230_v21  ;;  %2352 = vmatprep.subr.bf16.mxu0 %v1223_v2  ;;  %v1264_v21 = vld [vmem:[#allocation2 + $0x2b0] sm:$0xff]  ;;  %v1257_v2 = vld [vmem:[#allocation2 + $0x278] sm:$0xff] }
 0x35f   :  { %2374 = vmatprep.subr.bf16.mxu1 %v1239_v3  ;;  %v1273_v3 = vld [vmem:[#allocation2 + $0x2f8] sm:$0xff] }
 0x361   :  { %2353 = vmatpush3.bf16.msra.mxu0 %v1215_v4  ;;  %v1249_v4 = vld [vmem:[#allocation2 + $0x238] sm:$0xff] }
 0x362   :  { %2375 = vmatpush3.bf16.msra.mxu1 %v1231_v5  ;;  %2354 = vmatprep.subr.bf16.mxu0 %v1224_v6  ;;  %v1265_v5 = vld [vmem:[#allocation2 + $0x2b8] sm:$0xff]  ;;  %v1282_v6 = vld [vmem:[#allocation2 + $0x340] sm:$0xff] }
 0x363   :  { %2376 = vmatprep.subr.bf16.mxu1 %v1240_v7  ;;  %v1298_v7 = vld [vmem:[#allocation2 + $0x3c0] sm:$0xff] }
 0x365   :  { %2355 = vmatpush3.bf16.msra.mxu0 %v1216_v8  ;;  %v1274_v8 = vld [vmem:[#allocation2 + $0x300] sm:$0xff] }
 0x366   :  { %2377 = vmatpush3.bf16.msra.mxu1 %v1232_v9  ;;  %2356 = vmatprep.subr.bf16.mxu0 %v1225_v10  ;;  %v1290_v9 = vld [vmem:[#allocation2 + $0x380] sm:$0xff]  ;;  %v1283_v10 = vld [vmem:[#allocation2 + $0x348] sm:$0xff] }
 0x367   :  { %2378 = vmatprep.subr.bf16.mxu1 %v1241_v45  ;;  %v1299_v45 = vld [vmem:[#allocation2 + $0x3c8] sm:$0xff] }
 0x369   :  { %2357 = vmatpush3.bf16.msra.mxu0 %v1217_v12  ;;  %v1275_v12 = vld [vmem:[#allocation2 + $0x308] sm:$0xff] }
 0x36a   :  { %2379 = vmatpush3.bf16.msra.mxu1 %v1233_v19  ;;  %2386 = vmatprep.subr.bf16.mxu0 %v1250_v26  ;;  %v1291_v19 = vld [vmem:[#allocation2 + $0x388] sm:$0xff]  ;;  %v1284_v26 = vld [vmem:[#allocation2 + $0x350] sm:$0xff] }
 0x36b   :  { %2408 = vmatprep.subr.bf16.mxu1 %v1266_v27  ;;  %v1300_v27 = vld [vmem:[#allocation2 + $0x3d0] sm:$0xff] }
 0x36c   :  { %1548 = vmatmul.mubr.bf16.vlgmr.msra.gmra.mrb[28].mxu0 %v1117_v14  ;;  %v1244_v14 = vld [vmem:[#allocation2 + $0x210] sm:$0xff] }
 0x36d   :  { %1588 = vmatmul.mubr.bf16.vlgmr.msra.gmra.mrb[16].mxu1 %v1121_v15  ;;  %2387 = vmatpush3.bf16.msra.mxu0 %v1242_v28  ;;  %v1260_v15 = vld [vmem:[#allocation2 + $0x290] sm:$0xff]  ;;  %v1285_v28 = vld [vmem:[#allocation2 + $0x358] sm:$0xff] }
 0x36e   :  { %2409 = vmatpush3.bf16.msra.mxu1 %v1258_v29  ;;  %2388 = vmatprep.subr.bf16.mxu0 %v1251_v30  ;;  %v1301_v29 = vld [vmem:[#allocation2 + $0x3d8] sm:$0xff] }
 0x36f   :  { %2410 = vmatprep.subr.bf16.mxu1 %v1267_v46  ;;  %1627 = vmatprep.mubr.bf16.mxu0 %v1127_v22  ;;  %v1246_v22 = vld [vmem:[#allocation2 + $0x220] sm:$0xff]  ;;  %v1277_v30 = vld [vmem:[#allocation2 + $0x318] sm:$0xff] }
 0x370   :  { %1667 = vmatprep.mubr.bf16.mxu1 %v1131_v23  ;;  %v1262_v23 = vld [vmem:[#allocation2 + $0x2a0] sm:$0xff]  ;;  %v1293_v46 = vld [vmem:[#allocation2 + $0x398] sm:$0xff] }
 0x371   :  { %2389 = vmatpush3.bf16.msra.mxu0 %v1243_v47  ;;  %v1286_v47 = vld [vmem:[#allocation2 + $0x360] sm:$0xff] }
 0x372   :  { %2411 = vmatpush3.bf16.msra.mxu1 %v1259_v49  ;;  %2390 = vmatprep.subr.bf16.mxu0 %v1252_v50  ;;  %v1302_v49 = vld [vmem:[#allocation2 + $0x3e0] sm:$0xff]  ;;  %v1303_v50 = vld [vmem:[#allocation2 + $0x3e8] sm:$0xff] }
 0x373   :  { %2412 = vmatprep.subr.bf16.mxu1 %v1268_v51  ;;  %v1279_v51 = vld [vmem:[#allocation2 + $0x328] sm:$0xff] }
 0x375   :  { %2391 = vmatpush3.bf16.msra.mxu0 %v1244_v14  ;;  %v1295_v14 = vld [vmem:[#allocation2 + $0x3a8] sm:$0xff] }
 0x376   :  { %2413 = vmatpush3.bf16.msra.mxu1 %v1260_v15  ;;  %2392 = vmatprep.subr.bf16.mxu0 %v1253_v53  ;;  %v1288_v15 = vld [vmem:[#allocation2 + $0x370] sm:$0xff] }
 0x377   :  { %2414 = vmatprep.subr.bf16.mxu1 %v1269_v54  ;;  %v1304_v53 = vld [vmem:[#allocation2 + $0x3f0] sm:$0xff] }
 0x378   :  { %v1280_v54 = vld [vmem:[#allocation2 + $0x330] sm:$0xff] }
 0x379   :  { %2393 = vmatpush3.bf16.msra.mxu0 %v1245_v55  ;;  %v1296_v55 = vld [vmem:[#allocation2 + $0x3b0] sm:$0xff] }
 0x37a   :  { %2415 = vmatpush3.bf16.msra.mxu1 %v1261_v57  ;;  %2394 = vmatprep.subr.bf16.mxu0 %v1254_v58  ;;  %v1289_v57 = vld [vmem:[#allocation2 + $0x378] sm:$0xff] }
 0x37b   :  { %2416 = vmatprep.subr.bf16.mxu1 %v1270_v48  ;;  %v1305_v58 = vld [vmem:[#allocation2 + $0x3f8] sm:$0xff] }
 0x37c   :  { %v1281_v48 = vld [vmem:[#allocation2 + $0x338] sm:$0xff] }
 0x37d   :  { %2395 = vmatpush3.bf16.msra.mxu0 %v1246_v22  ;;  %v1297_v22 = vld [vmem:[#allocation2 + $0x3b8] sm:$0xff] }
 0x37e   :  { %2417 = vmatpush3.bf16.msra.mxu1 %v1262_v23  ;;  %2396 = vmatprep.subr.bf16.mxu0 %v1255_v60  ;;  %v1314_v23 = vld [vmem:[#allocation2 + $0x440] sm:$0xff] }
 0x37f   :  { %2418 = vmatprep.subr.bf16.mxu1 %v1271_v61  ;;  %v1330_v60 = vld [vmem:[#allocation2 + $0x4c0] sm:$0xff] }
 0x380   :  { %v1306_v61 = vld [vmem:[#allocation2 + $0x400] sm:$0xff] }
 0x381   :  { %2397 = vmatpush3.bf16.msra.mxu0 %v1247_v62  ;;  %v1322_v62 = vld [vmem:[#allocation2 + $0x480] sm:$0xff] }
 0x382   :  { %2419 = vmatpush3.bf16.msra.mxu1 %v1263_v63  ;;  %2398 = vmatprep.subr.bf16.mxu0 %v1256_v0  ;;  %v1315_v63 = vld [vmem:[#allocation2 + $0x448] sm:$0xff] }
 0x383   :  { %2420 = vmatprep.subr.bf16.mxu1 %v1272_v1  ;;  %v1331_v0 = vld [vmem:[#allocation2 + $0x4c8] sm:$0xff] }
 0x384   :  { %v1307_v1 = vld [vmem:[#allocation2 + $0x408] sm:$0xff] }
 0x385   :  { %2399 = vmatpush3.bf16.msra.mxu0 %v1248_v56  ;;  %v1323_v56 = vld [vmem:[#allocation2 + $0x488] sm:$0xff] }
 0x386   :  { %2421 = vmatpush3.bf16.msra.mxu1 %v1264_v21  ;;  %2400 = vmatprep.subr.bf16.mxu0 %v1257_v2  ;;  %v1316_v21 = vld [vmem:[#allocation2 + $0x450] sm:$0xff] }
 0x387   :  { %2422 = vmatprep.subr.bf16.mxu1 %v1273_v3  ;;  %v1332_v2 = vld [vmem:[#allocation2 + $0x4d0] sm:$0xff]  ;;  %v1333_v3 = vld [vmem:[#allocation2 + $0x4d8] sm:$0xff] }
 0x389   :  { %2401 = vmatpush3.bf16.msra.mxu0 %v1249_v4  ;;  %v1309_v4 = vld [vmem:[#allocation2 + $0x418] sm:$0xff] }
 0x38a   :  { %2423 = vmatpush3.bf16.msra.mxu1 %v1265_v5  ;;  %2430 = vmatprep.subr.bf16.mxu0 %v1282_v6  ;;  %v1325_v5 = vld [vmem:[#allocation2 + $0x498] sm:$0xff]  ;;  %v1318_v6 = vld [vmem:[#allocation2 + $0x460] sm:$0xff] }
 0x38b   :  { %2452 = vmatprep.subr.bf16.mxu1 %v1298_v7  ;;  %v1334_v7 = vld [vmem:[#allocation2 + $0x4e0] sm:$0xff] }
 0x38c   :  { %1628 = vmatmul.mubr.bf16.vlgmr.msra.gmra.mrb[32].mxu0 %v1125_v25  ;;  %v1276_v25 = vld [vmem:[#allocation2 + $0x310] sm:$0xff] }
 0x38d   :  { %1668 = vmatmul.mubr.bf16.vlgmr.msra.gmra.mrb[20].mxu1 %v1129_v40  ;;  %2431 = vmatpush3.bf16.msra.mxu0 %v1274_v8  ;;  %v1292_v40 = vld [vmem:[#allocation2 + $0x390] sm:$0xff]  ;;  %v1326_v8 = vld [vmem:[#allocation2 + $0x4a0] sm:$0xff] }
 0x38e   :  { %2453 = vmatpush3.bf16.msra.mxu1 %v1290_v9  ;;  %2432 = vmatprep.subr.bf16.mxu0 %v1283_v10  ;;  %v1319_v9 = vld [vmem:[#allocation2 + $0x468] sm:$0xff] }
 0x38f   :  { %2454 = vmatprep.subr.bf16.mxu1 %v1299_v45  ;;  %1707 = vmatprep.mubr.bf16.mxu0 %v1135_v18  ;;  %v1294_v18 = vld [vmem:[#allocation2 + $0x3a0] sm:$0xff]  ;;  %v1335_v10 = vld [vmem:[#allocation2 + $0x4e8] sm:$0xff] }
 0x390   :  { %1747 = vmatprep.mubr.bf16.mxu1 %v1139_v24  ;;  %v1287_v24 = vld [vmem:[#allocation2 + $0x368] sm:$0xff] }
 0x391   :  { %2433 = vmatpush3.bf16.msra.mxu0 %v1275_v12  ;;  %v1311_v45 = vld [vmem:[#allocation2 + $0x428] sm:$0xff] }
 0x392   :  { %2455 = vmatpush3.bf16.msra.mxu1 %v1291_v19  ;;  %2434 = vmatprep.subr.bf16.mxu0 %v1284_v26  ;;  %v1327_v12 = vld [vmem:[#allocation2 + $0x4a8] sm:$0xff]  ;;  %v1320_v19 = vld [vmem:[#allocation2 + $0x470] sm:$0xff] }
 0x393   :  { %2456 = vmatprep.subr.bf16.mxu1 %v1300_v27  ;;  %v1336_v26 = vld [vmem:[#allocation2 + $0x4f0] sm:$0xff] }
 0x394   :  { %v1312_v27 = vld [vmem:[#allocation2 + $0x430] sm:$0xff] }
 0x395   :  { %2435 = vmatpush3.bf16.msra.mxu0 %v1276_v25  ;;  %v1328_v25 = vld [vmem:[#allocation2 + $0x4b0] sm:$0xff] }
 0x396   :  { %2457 = vmatpush3.bf16.msra.mxu1 %v1292_v40  ;;  %2436 = vmatprep.subr.bf16.mxu0 %v1285_v28  ;;  %v1321_v40 = vld [vmem:[#allocation2 + $0x478] sm:$0xff] }
 0x397   :  { %2458 = vmatprep.subr.bf16.mxu1 %v1301_v29  ;;  %v1337_v28 = vld [vmem:[#allocation2 + $0x4f8] sm:$0xff] }
 0x398   :  { %v1313_v29 = vld [vmem:[#allocation2 + $0x438] sm:$0xff] }
 0x399   :  { %2437 = vmatpush3.bf16.msra.mxu0 %v1277_v30  ;;  %v1329_v30 = vld [vmem:[#allocation2 + $0x4b8] sm:$0xff] }
 0x39a   :  { %2459 = vmatpush3.bf16.msra.mxu1 %v1293_v46  ;;  %2438 = vmatprep.subr.bf16.mxu0 %v1286_v47  ;;  %v1346_v46 = vld [vmem:[#allocation2 + $0x540] sm:$0xff] }
 0x39b   :  { %2460 = vmatprep.subr.bf16.mxu1 %v1302_v49  ;;  %v1362_v47 = vld [vmem:[#allocation2 + $0x5c0] sm:$0xff] }
 0x39c   :  { %v1338_v49 = vld [vmem:[#allocation2 + $0x500] sm:$0xff] }
 0x39d   :  { %2439 = vmatpush3.bf16.msra.mxu0 %v1278_v13  ;;  %v1354_v13 = vld [vmem:[#allocation2 + $0x580] sm:$0xff] }
 0x39e   :  { %2461 = vmatpush3.bf16.msra.mxu1 %v1294_v18  ;;  %2440 = vmatprep.subr.bf16.mxu0 %v1287_v24  ;;  %v1347_v18 = vld [vmem:[#allocation2 + $0x548] sm:$0xff] }
 0x39f   :  { %2462 = vmatprep.subr.bf16.mxu1 %v1303_v50  ;;  %v1363_v24 = vld [vmem:[#allocation2 + $0x5c8] sm:$0xff] }
 0x3a0   :  { %v1339_v50 = vld [vmem:[#allocation2 + $0x508] sm:$0xff] }
 0x3a1   :  { %2441 = vmatpush3.bf16.msra.mxu0 %v1279_v51  ;;  %v1355_v51 = vld [vmem:[#allocation2 + $0x588] sm:$0xff] }
 0x3a2   :  { %2463 = vmatpush3.bf16.msra.mxu1 %v1295_v14  ;;  %2442 = vmatprep.subr.bf16.mxu0 %v1288_v15  ;;  %v1348_v14 = vld [vmem:[#allocation2 + $0x550] sm:$0xff] }
 0x3a3   :  { %2464 = vmatprep.subr.bf16.mxu1 %v1304_v53  ;;  %v1364_v15 = vld [vmem:[#allocation2 + $0x5d0] sm:$0xff] }
 0x3a4   :  { %v1340_v53 = vld [vmem:[#allocation2 + $0x510] sm:$0xff] }
 0x3a5   :  { %2443 = vmatpush3.bf16.msra.mxu0 %v1280_v54  ;;  %v1349_v54 = vld [vmem:[#allocation2 + $0x558] sm:$0xff] }
 0x3a6   :  { %2465 = vmatpush3.bf16.msra.mxu1 %v1296_v55  ;;  %2444 = vmatprep.subr.bf16.mxu0 %v1289_v57  ;;  %v1365_v55 = vld [vmem:[#allocation2 + $0x5d8] sm:$0xff] }
 0x3a7   :  { %2466 = vmatprep.subr.bf16.mxu1 %v1305_v58  ;;  %v1341_v57 = vld [vmem:[#allocation2 + $0x518] sm:$0xff] }
 0x3a8   :  { %v1357_v58 = vld [vmem:[#allocation2 + $0x598] sm:$0xff] }
 0x3a9   :  { %2445 = vmatpush3.bf16.msra.mxu0 %v1281_v48  ;;  %v1350_v48 = vld [vmem:[#allocation2 + $0x560] sm:$0xff] }
 0x3aa   :  { %2467 = vmatpush3.bf16.msra.mxu1 %v1297_v22  ;;  %2474 = vmatprep.subr.bf16.mxu0 %v1314_v23  ;;  %v1366_v22 = vld [vmem:[#allocation2 + $0x5e0] sm:$0xff]  ;;  %v1351_v23 = vld [vmem:[#allocation2 + $0x568] sm:$0xff] }
 0x3ab   :  { %2496 = vmatprep.subr.bf16.mxu1 %v1330_v60  ;;  %v1367_v60 = vld [vmem:[#allocation2 + $0x5e8] sm:$0xff] }
 0x3ac   :  { %1708 = vmatmul.mubr.bf16.vlgmr.msra.gmra.mrb[36].mxu0 %v1133_v16  ;;  %v1308_v16 = vld [vmem:[#allocation2 + $0x410] sm:$0xff] }
 0x3ad   :  { %1748 = vmatmul.mubr.bf16.vlgmr.msra.gmra.mrb[24].mxu1 %v1137_v17  ;;  %2475 = vmatpush3.bf16.msra.mxu0 %v1306_v61  ;;  %v1317_v17 = vld [vmem:[#allocation2 + $0x458] sm:$0xff]  ;;  %v1343_v61 = vld [vmem:[#allocation2 + $0x528] sm:$0xff] }
 0x3ae   :  { %2497 = vmatpush3.bf16.msra.mxu1 %v1322_v62  ;;  %2476 = vmatprep.subr.bf16.mxu0 %v1315_v63  ;;  %v1359_v62 = vld [vmem:[#allocation2 + $0x5a8] sm:$0xff]  ;;  %v1352_v63 = vld [vmem:[#allocation2 + $0x570] sm:$0xff] }
 0x3af   :  { %2498 = vmatprep.subr.bf16.mxu1 %v1331_v0  ;;  %1787 = vmatprep.mubr.bf16.mxu0 %v3177_v32  ;;  %v1368_v0 = vld [vmem:[#allocation2 + $0x5f0] sm:$0xff]  ;;  %v1406_v32 = vld [vmem:[#allocation2 + $0x720] sm:$0xff] }
 0x3b0   :  { %1827 = vmatprep.mubr.bf16.mxu1 %v1148_v38  ;;  %v1310_v38 = vld [vmem:[#allocation2 + $0x420] sm:$0xff] }
 0x3b1   :  { %2477 = vmatpush3.bf16.msra.mxu0 %v1307_v1  ;;  %v1344_v1 = vld [vmem:[#allocation2 + $0x530] sm:$0xff] }
 0x3b2   :  { %2499 = vmatpush3.bf16.msra.mxu1 %v1323_v56  ;;  %2478 = vmatprep.subr.bf16.mxu0 %v1316_v21  ;;  %v1360_v56 = vld [vmem:[#allocation2 + $0x5b0] sm:$0xff]  ;;  %v1353_v21 = vld [vmem:[#allocation2 + $0x578] sm:$0xff] }
 0x3b3   :  { %2500 = vmatprep.subr.bf16.mxu1 %v1332_v2  ;;  %v1369_v2 = vld [vmem:[#allocation2 + $0x5f8] sm:$0xff] }
 0x3b5   :  { %2479 = vmatpush3.bf16.msra.mxu0 %v1308_v16  ;;  %v1345_v16 = vld [vmem:[#allocation2 + $0x538] sm:$0xff] }
 0x3b6   :  { %2501 = vmatpush3.bf16.msra.mxu1 %v1324_v11  ;;  %2480 = vmatprep.subr.bf16.mxu0 %v1317_v17  ;;  %v1361_v11 = vld [vmem:[#allocation2 + $0x5b8] sm:$0xff]  ;;  %v1378_v17 = vld [vmem:[#allocation2 + $0x640] sm:$0xff] }
 0x3b7   :  { %2502 = vmatprep.subr.bf16.mxu1 %v1333_v3  ;;  %v1394_v3 = vld [vmem:[#allocation2 + $0x6c0] sm:$0xff] }
 0x3b9   :  { %2481 = vmatpush3.bf16.msra.mxu0 %v1309_v4  ;;  %v1370_v4 = vld [vmem:[#allocation2 + $0x600] sm:$0xff] }
 0x3ba   :  { %2503 = vmatpush3.bf16.msra.mxu1 %v1325_v5  ;;  %2482 = vmatprep.subr.bf16.mxu0 %v1318_v6  ;;  %v1386_v5 = vld [vmem:[#allocation2 + $0x680] sm:$0xff]  ;;  %v1379_v6 = vld [vmem:[#allocation2 + $0x648] sm:$0xff] }
 0x3bb   :  { %2504 = vmatprep.subr.bf16.mxu1 %v1334_v7  ;;  %v1395_v7 = vld [vmem:[#allocation2 + $0x6c8] sm:$0xff] }
 0x3bd   :  { %2483 = vmatpush3.bf16.msra.mxu0 %v1310_v38  ;;  %v1371_v38 = vld [vmem:[#allocation2 + $0x608] sm:$0xff] }
 0x3be   :  { %2505 = vmatpush3.bf16.msra.mxu1 %v1326_v8  ;;  %2484 = vmatprep.subr.bf16.mxu0 %v1319_v9  ;;  %v1387_v8 = vld [vmem:[#allocation2 + $0x688] sm:$0xff]  ;;  %v1380_v9 = vld [vmem:[#allocation2 + $0x650] sm:$0xff] }
 0x3bf   :  { %2506 = vmatprep.subr.bf16.mxu1 %v1335_v10  ;;  %v1396_v10 = vld [vmem:[#allocation2 + $0x6d0] sm:$0xff] }
 0x3c1   :  { %2485 = vmatpush3.bf16.msra.mxu0 %v1311_v45  ;;  %v1381_v45 = vld [vmem:[#allocation2 + $0x658] sm:$0xff] }
 0x3c2   :  { %2507 = vmatpush3.bf16.msra.mxu1 %v1327_v12  ;;  %2486 = vmatprep.subr.bf16.mxu0 %v1320_v19  ;;  %v1397_v12 = vld [vmem:[#allocation2 + $0x6d8] sm:$0xff] }
 0x3c3   :  { %2508 = vmatprep.subr.bf16.mxu1 %v1336_v26  ;;  %v1373_v19 = vld [vmem:[#allocation2 + $0x618] sm:$0xff] }
 0x3c4   :  { %v1389_v26 = vld [vmem:[#allocation2 + $0x698] sm:$0xff] }
 0x3c5   :  { %2487 = vmatpush3.bf16.msra.mxu0 %v1312_v27  ;;  %v1382_v27 = vld [vmem:[#allocation2 + $0x660] sm:$0xff] }
 0x3c6   :  { %2509 = vmatpush3.bf16.msra.mxu1 %v1328_v25  ;;  %2488 = vmatprep.subr.bf16.mxu0 %v1321_v40  ;;  %v1398_v25 = vld [vmem:[#allocation2 + $0x6e0] sm:$0xff]  ;;  %v1383_v40 = vld [vmem:[#allocation2 + $0x668] sm:$0xff] }
 0x3c7   :  { %2510 = vmatprep.subr.bf16.mxu1 %v1337_v28  ;;  %v1399_v28 = vld [vmem:[#allocation2 + $0x6e8] sm:$0xff] }
 0x3c9   :  { %2489 = vmatpush3.bf16.msra.mxu0 %v1313_v29  ;;  %v1375_v29 = vld [vmem:[#allocation2 + $0x628] sm:$0xff] }
 0x3ca   :  { %2511 = vmatpush3.bf16.msra.mxu1 %v1329_v30  ;;  %2518 = vmatprep.subr.bf16.mxu0 %v1346_v46  ;;  %v1391_v30 = vld [vmem:[#allocation2 + $0x6a8] sm:$0xff]  ;;  %v1384_v46 = vld [vmem:[#allocation2 + $0x670] sm:$0xff] }
 0x3cb   :  { %2540 = vmatprep.subr.bf16.mxu1 %v1362_v47  ;;  %v1400_v47 = vld [vmem:[#allocation2 + $0x6f0] sm:$0xff] }
 0x3cc   :  { %1788 = vmatmul.mubr.bf16.vlgmr.msra.gmra.mrb[40].mxu0 %v3174_v31 }
 0x3cd   :  { %1828 = vmatmul.mubr.bf16.vlgmr.msra.gmra.mrb[28].mxu1 %v1146_v33  ;;  %2519 = vmatpush3.bf16.msra.mxu0 %v1338_v49  ;;  %v1356_v33 = vld [vmem:[#allocation2 + $0x590] sm:$0xff] }
 0x3ce   :  { %2541 = vmatpush3.bf16.msra.mxu1 %v1354_v13  ;;  %2520 = vmatprep.subr.bf16.mxu0 %v1347_v18  ;;  %v1376_v49 = vld [vmem:[#allocation2 + $0x630] sm:$0xff]  ;;  %v1385_v18 = vld [vmem:[#allocation2 + $0x678] sm:$0xff] }
 0x3cf   :  { %2542 = vmatprep.subr.bf16.mxu1 %v1363_v24  ;;  %1867 = vmatprep.mubr.bf16.mxu0 %v1152_v39  ;;  %v1342_v39 = vld [vmem:[#allocation2 + $0x520] sm:$0xff]  ;;  %v1392_v13 = vld [vmem:[#allocation2 + $0x6b0] sm:$0xff]  ;;  %v1401_v24 = vld [vmem:[#allocation2 + $0x6f8] sm:$0xff] }
 0x3d0   :  { %1907 = vmatprep.mubr.bf16.mxu1 %v1156_v20  ;;  %v1358_v20 = vld [vmem:[#allocation2 + $0x5a0] sm:$0xff] }
 0x3d1   :  { %2521 = vmatpush3.bf16.msra.mxu0 %v1339_v50  ;;  %v1377_v50 = vld [vmem:[#allocation2 + $0x638] sm:$0xff] }
 0x3d2   :  { %2543 = vmatpush3.bf16.msra.mxu1 %v1355_v51  ;;  %2522 = vmatprep.subr.bf16.mxu0 %v1348_v14  ;;  %v1393_v51 = vld [vmem:[#allocation2 + $0x6b8] sm:$0xff]  ;;  %v1410_v14 = vld [vmem:[#allocation2 + $0x740] sm:$0xff] }
 0x3d3   :  { %2544 = vmatprep.subr.bf16.mxu1 %v1364_v15  ;;  %v1426_v15 = vld [vmem:[#allocation2 + $0x7c0] sm:$0xff] }
 0x3d5   :  { %2523 = vmatpush3.bf16.msra.mxu0 %v1340_v53  ;;  %v1402_v53 = vld [vmem:[#allocation2 + $0x700] sm:$0xff] }
 0x3d6   :  { %2545 = vmatpush3.bf16.msra.mxu1 %v1356_v33  ;;  %2524 = vmatprep.subr.bf16.mxu0 %v1349_v54  ;;  %v1418_v33 = vld [vmem:[#allocation2 + $0x780] sm:$0xff]  ;;  %v1411_v54 = vld [vmem:[#allocation2 + $0x748] sm:$0xff] }
 0x3d7   :  { %2546 = vmatprep.subr.bf16.mxu1 %v1365_v55  ;;  %v1427_v55 = vld [vmem:[#allocation2 + $0x7c8] sm:$0xff] }
 0x3d9   :  { %2525 = vmatpush3.bf16.msra.mxu0 %v1341_v57  ;;  %v1403_v57 = vld [vmem:[#allocation2 + $0x708] sm:$0xff] }
 0x3da   :  { %2547 = vmatpush3.bf16.msra.mxu1 %v1357_v58  ;;  %2526 = vmatprep.subr.bf16.mxu0 %v1350_v48  ;;  %v1419_v58 = vld [vmem:[#allocation2 + $0x788] sm:$0xff]  ;;  %v1412_v48 = vld [vmem:[#allocation2 + $0x750] sm:$0xff] }
 0x3db   :  { %2548 = vmatprep.subr.bf16.mxu1 %v1366_v22  ;;  %v1428_v22 = vld [vmem:[#allocation2 + $0x7d0] sm:$0xff] }
 0x3dd   :  { %2527 = vmatpush3.bf16.msra.mxu0 %v1342_v39  ;;  %v1413_v39 = vld [vmem:[#allocation2 + $0x758] sm:$0xff] }
 0x3de   :  { %2549 = vmatpush3.bf16.msra.mxu1 %v1358_v20  ;;  %2528 = vmatprep.subr.bf16.mxu0 %v1351_v23  ;;  %v1429_v20 = vld [vmem:[#allocation2 + $0x7d8] sm:$0xff] }
 0x3df   :  { %2550 = vmatprep.subr.bf16.mxu1 %v1367_v60  ;;  %v1405_v23 = vld [vmem:[#allocation2 + $0x718] sm:$0xff] }
 0x3e0   :  { %v1421_v60 = vld [vmem:[#allocation2 + $0x798] sm:$0xff] }
 0x3e1   :  { %2529 = vmatpush3.bf16.msra.mxu0 %v1343_v61  ;;  %v1414_v61 = vld [vmem:[#allocation2 + $0x760] sm:$0xff] }
 0x3e2   :  { %2551 = vmatpush3.bf16.msra.mxu1 %v1359_v62  ;;  %2530 = vmatprep.subr.bf16.mxu0 %v1352_v63  ;;  %v1430_v62 = vld [vmem:[#allocation2 + $0x7e0] sm:$0xff]  ;;  %v1431_v63 = vld [vmem:[#allocation2 + $0x7e8] sm:$0xff] }
 0x3e3   :  { %2552 = vmatprep.subr.bf16.mxu1 %v1368_v0  ;;  %v1407_v0 = vld [vmem:[#allocation2 + $0x728] sm:$0xff] }
 0x3e5   :  { %2531 = vmatpush3.bf16.msra.mxu0 %v1344_v1  ;;  %v1423_v1 = vld [vmem:[#allocation2 + $0x7a8] sm:$0xff] }
 0x3e6   :  { %2553 = vmatpush3.bf16.msra.mxu1 %v1360_v56  ;;  %2532 = vmatprep.subr.bf16.mxu0 %v1353_v21 }
 0x3e7   :  { %2554 = vmatprep.subr.bf16.mxu1 %v1369_v2  ;;  %v1416_v2 = vld [vmem:[#allocation2 + $0x770] sm:$0xff] }
 0x3e9   :  { %2533 = vmatpush3.bf16.msra.mxu0 %v1345_v16  ;;  %v1432_v16 = vld [vmem:[#allocation2 + $0x7f0] sm:$0xff] }
 0x3ea   :  { %2555 = vmatpush3.bf16.msra.mxu1 %v1361_v11  ;;  %2562 = vmatprep.subr.bf16.mxu0 %v1378_v17  ;;  %v1434_v11 = vld [vmem:[%s3270_s10] sm:$0x1] }
 0x3eb   :  { %2584 = vmatprep.subr.bf16.mxu1 %v1394_v3 }
 0x3ec   :  { %1868 = vmatmul.mubr.bf16.vlgmr.msra.gmra.mrb[44].mxu0 %v1150_v34  ;;  %v1372_v34 = vld [vmem:[#allocation2 + $0x610] sm:$0xff] }
 0x3ed   :  { %1908 = vmatmul.mubr.bf16.vlgmr.msra.gmra.mrb[32].mxu1 %v1154_v35  ;;  %2563 = vmatpush3.bf16.msra.mxu0 %v1370_v4  ;;  %v1388_v35 = vld [vmem:[#allocation2 + $0x690] sm:$0xff] }
 0x3ee   :  { %2585 = vmatpush3.bf16.msra.mxu1 %v1386_v5  ;;  %2564 = vmatprep.subr.bf16.mxu0 %v1379_v6 }
 0x3ef   :  { %2586 = vmatprep.subr.bf16.mxu1 %v1395_v7  ;;  %1947 = vmatprep.mubr.bf16.mxu0 %v1160_v41  ;;  %v1374_v41 = vld [vmem:[#allocation2 + $0x620] sm:$0xff] }
 0x3f0   :  { %1987 = vmatprep.mubr.bf16.mxu1 %v1164_v42  ;;  %v1390_v42 = vld [vmem:[#allocation2 + $0x6a0] sm:$0xff] }
 0x3f1   :  { %2565 = vmatpush3.bf16.msra.mxu0 %v1371_v38 }
 0x3f2   :  { %2587 = vmatpush3.bf16.msra.mxu1 %v1387_v8  ;;  %2566 = vmatprep.subr.bf16.mxu0 %v1380_v9  ;;  %v1408_v9 = vld [vmem:[#allocation2 + $0x730] sm:$0xff] }
 0x3f3   :  { %2588 = vmatprep.subr.bf16.mxu1 %v1396_v10  ;;  %v1424_v10 = vld [vmem:[#allocation2 + $0x7b0] sm:$0xff] }
 0x3f5   :  { %2567 = vmatpush3.bf16.msra.mxu0 %v1372_v34 }
 0x3f6   :  { %2589 = vmatpush3.bf16.msra.mxu1 %v1388_v35  ;;  %2568 = vmatprep.subr.bf16.mxu0 %v1381_v45  ;;  %v1417_v35 = vld [vmem:[#allocation2 + $0x778] sm:$0xff] }
 0x3f7   :  { %2590 = vmatprep.subr.bf16.mxu1 %v1397_v12  ;;  %v1433_v45 = vld [vmem:[#allocation2 + $0x7f8] sm:$0xff] }
 0x3f9   :  { %2569 = vmatpush3.bf16.msra.mxu0 %v1373_v19  ;;  %v1409_v19 = vld [vmem:[#allocation2 + $0x738] sm:$0xff] }
 0x3fa   :  { %2591 = vmatpush3.bf16.msra.mxu1 %v1389_v26  ;;  %2570 = vmatprep.subr.bf16.mxu0 %v1382_v27  ;;  %v1425_v26 = vld [vmem:[#allocation2 + $0x7b8] sm:$0xff] }
 0x3fb   :  { %2592 = vmatprep.subr.bf16.mxu1 %v1398_v25 }
 0x3fd   :  { %2571 = vmatpush3.bf16.msra.mxu0 %v1374_v41 }
 0x3fe   :  { %2593 = vmatpush3.bf16.msra.mxu1 %v1390_v42  ;;  %2572 = vmatprep.subr.bf16.mxu0 %v1383_v40 }
 0x3ff   :  { %2594 = vmatprep.subr.bf16.mxu1 %v1399_v28 }
 0x401   :  { %2573 = vmatpush3.bf16.msra.mxu0 %v1375_v29 }
 0x402   :  { %2595 = vmatpush3.bf16.msra.mxu1 %v1391_v30  ;;  %2574 = vmatprep.subr.bf16.mxu0 %v1384_v46 }
 0x403   :  { %2596 = vmatprep.subr.bf16.mxu1 %v1400_v47 }
 0x405   :  { %2575 = vmatpush3.bf16.msra.mxu0 %v1376_v49 }
 0x406   :  { %2597 = vmatpush3.bf16.msra.mxu1 %v1392_v13  ;;  %2576 = vmatprep.subr.bf16.mxu0 %v1385_v18 }
 0x407   :  { %2598 = vmatprep.subr.bf16.mxu1 %v1401_v24 }
 0x409   :  { %2577 = vmatpush3.bf16.msra.mxu0 %v1377_v50 }
 0x40a   :  { %2599 = vmatpush3.bf16.msra.mxu1 %v1393_v51  ;;  %2606 = vmatprep.subr.bf16.mxu0 %v1410_v14 }
 0x40b   :  { %2628 = vmatprep.subr.bf16.mxu1 %v1426_v15 }
 0x40c   :  { %1948 = vmatmul.mubr.bf16.vlgmr.msra.gmra.mrb[48].mxu0 %v1158_v36  ;;  %v1404_v36 = vld [vmem:[#allocation2 + $0x710] sm:$0xff] }
 0x40d   :  { %1988 = vmatmul.mubr.bf16.vlgmr.msra.gmra.mrb[36].mxu1 %v1162_v59  ;;  %2607 = vmatpush3.bf16.msra.mxu0 %v1402_v53  ;;  %v1420_v59 = vld [vmem:[#allocation2 + $0x790] sm:$0xff] }
 0x40e   :  { %2629 = vmatpush3.bf16.msra.mxu1 %v1418_v33  ;;  %2608 = vmatprep.subr.bf16.mxu0 %v1411_v54 }
 0x40f   :  { %2630 = vmatprep.subr.bf16.mxu1 %v1427_v55  ;;  %2027 = vmatprep.mubr.bf16.mxu0 %v1168_v43  ;;  %v1422_v43 = vld [vmem:[#allocation2 + $0x7a0] sm:$0xff] }
 0x410   :  { %2067 = vmatprep.mubr.bf16.mxu1 %v1172_v44  ;;  %v1415_v44 = vld [vmem:[#allocation2 + $0x768] sm:$0xff] }
 0x411   :  { %2609 = vmatpush3.bf16.msra.mxu0 %v1403_v57 }
 0x412   :  { %2631 = vmatpush3.bf16.msra.mxu1 %v1419_v58  ;;  %2610 = vmatprep.subr.bf16.mxu0 %v1412_v48 }
 0x413   :  { %2632 = vmatprep.subr.bf16.mxu1 %v1428_v22 }
 0x415   :  { %2611 = vmatpush3.bf16.msra.mxu0 %v1404_v36 }
 0x416   :  { %2633 = vmatpush3.bf16.msra.mxu1 %v1420_v59  ;;  %2612 = vmatprep.subr.bf16.mxu0 %v1413_v39 }
 0x417   :  { %2634 = vmatprep.subr.bf16.mxu1 %v1429_v20 }
 0x419   :  { %2613 = vmatpush3.bf16.msra.mxu0 %v1405_v23 }
 0x41a   :  { %2635 = vmatpush3.bf16.msra.mxu1 %v1421_v60  ;;  %2614 = vmatprep.subr.bf16.mxu0 %v1414_v61 }
 0x41b   :  { %2636 = vmatprep.subr.bf16.mxu1 %v1430_v62 }
 0x41d   :  { %2615 = vmatpush3.bf16.msra.mxu0 %v1406_v32 }
 0x41e   :  { %2637 = vmatpush3.bf16.msra.mxu1 %v1422_v43  ;;  %2616 = vmatprep.subr.bf16.mxu0 %v1415_v44 }
 0x41f   :  { %2638 = vmatprep.subr.bf16.mxu1 %v1431_v63  ;;  %v2314_v56 = vpop.f32.mrb[24].mxu0 }
 0x420   :  { %v2336_v21 = vpop.f32.mrb[12].mxu1  ;;  %v2315_v17 = vpop.f32.mrb[25].mxu0 }
 0x421   :  { %v2337_v3 = vpop.f32.mrb[13].mxu1  ;;  %v2316_v4 = vadd.f32 %v2315_v17, %v2314_v56  ;;  %v2317_v6 = vpop.f32.mrb[26].mxu0  ;;  %2617 = vmatpush3.bf16.msra.mxu0 %v1407_v0 }
 0x422   :  { %v2338_v5 = vadd.f32 %v2337_v3, %v2336_v21  ;;  %v2339_v7 = vpop.f32.mrb[14].mxu1  ;;  %2639 = vmatpush3.bf16.msra.mxu1 %v1423_v1  ;;  %v2318_v38 = vpop.f32.mrb[27].mxu0  ;;  %2618 = vmatprep.subr.bf16.mxu0 %v1416_v2 }
 0x423   :  { %v2340_v8 = vpop.f32.mrb[15].mxu1  ;;  %2640 = vmatprep.subr.bf16.mxu1 %v1432_v16  ;;  %v1470_v34 = vadd.f32 %v2316_v4, %v1434_v11 }
 0x425   :  { %v1510_v12 = vadd.f32 %v2338_v5, %v1470_v34  ;;  %2619 = vmatpush3.bf16.msra.mxu0 %v1408_v9 }
 0x426   :  { %2641 = vmatpush3.bf16.msra.mxu1 %v1424_v10  ;;  %2620 = vmatprep.subr.bf16.mxu0 %v1417_v35 }
 0x427   :  { %2642 = vmatprep.subr.bf16.mxu1 %v1433_v45 }
 0x429   :  { %2621 = vmatpush3.bf16.msra.mxu0 %v1409_v19 }
 0x42a   :  { %2643 = vmatpush3.bf16.msra.mxu1 %v1425_v26 }
 0x42c   :  { %2028 = vmatmul.mubr.bf16.vlgmr.msra.gmra.mrb[52].mxu0 %v1166_v37 }
 0x42d   :  { %2068 = vmatmul.mubr.bf16.vlgmr.msra.gmra.mrb[40].mxu1 %v1170_v52 }
 0x43f   :  { %v2358_v27 = vpop.f32.mrb[28].mxu0 }
 0x440   :  { %v2380_v25 = vpop.f32.mrb[16].mxu1  ;;  %v2359_v41 = vpop.f32.mrb[29].mxu0 }
 0x441   :  { %v2381_v42 = vpop.f32.mrb[17].mxu1  ;;  %v2360_v40 = vadd.f32 %v2359_v41, %v2358_v27  ;;  %v2361_v29 = vpop.f32.mrb[30].mxu0 }
 0x442   :  { %v2382_v28 = vadd.f32 %v2381_v42, %v2380_v25  ;;  %v2383_v30 = vpop.f32.mrb[18].mxu1  ;;  %v2362_v46 = vpop.f32.mrb[31].mxu0 }
 0x443   :  { %v2384_v47 = vpop.f32.mrb[19].mxu1  ;;  %v1550_v49 = vadd.f32 %v2360_v40, %v1510_v12 }
 0x445   :  { %v1590_v13 = vadd.f32 %v2382_v28, %v1550_v49 }
 0x45f   :  { %v2402_v18 = vpop.f32.mrb[32].mxu0 }
 0x460   :  { %v2424_v24 = vpop.f32.mrb[20].mxu1  ;;  %v2403_v50 = vpop.f32.mrb[33].mxu0 }
 0x461   :  { %v2425_v51 = vpop.f32.mrb[21].mxu1  ;;  %v2404_v37 = vadd.f32 %v2403_v50, %v2402_v18  ;;  %v2405_v31 = vpop.f32.mrb[34].mxu0 }
 0x462   :  { %v2426_v14 = vadd.f32 %v2425_v51, %v2424_v24  ;;  %v2427_v52 = vpop.f32.mrb[22].mxu1  ;;  %v2406_v15 = vpop.f32.mrb[35].mxu0 }
 0x463   :  { %v2428_v53 = vpop.f32.mrb[23].mxu1  ;;  %v1630_v33 = vadd.f32 %v2404_v37, %v1590_v13  ;;  %v2075_v37 = vld [vmem:[%s3262_s2] sm:$0x1] }
 0x464   :  { %vm2076_vm2 = vcmp.gt.f32.partialorder %v2075_v37, 0.0 }
 0x465   :  { %v1670_v54 = vadd.f32 %v2426_v14, %v1630_v33 }
 0x47f   :  { %v2446_v55 = vpop.f32.mrb[36].mxu0 }
 0x480   :  { %v2468_v57 = vpop.f32.mrb[24].mxu1  ;;  %v2447_v58 = vpop.f32.mrb[37].mxu0 }
 0x481   :  { %v2469_v48 = vpop.f32.mrb[25].mxu1  ;;  %v2448_v22 = vadd.f32 %v2447_v58, %v2446_v55  ;;  %v2449_v59 = vpop.f32.mrb[38].mxu0  ;;  %v2897_v58 = vmov 0.0  }
 0x482   :  { %v2470_v36 = vadd.f32 %v2469_v48, %v2468_v57  ;;  %v2471_v39 = vpop.f32.mrb[26].mxu1  ;;  %v2450_v20 = vpop.f32.mrb[39].mxu0  ;;  %v2182_v48 = vsel %vm2076_vm2, 1.0, %v2897_v58 }
 0x483   :  { %v2472_v23 = vpop.f32.mrb[27].mxu1  ;;  %v1710_v60 = vadd.f32 %v2448_v22, %v1670_v54 }
 0x485   :  { %v1750_v61 = vadd.f32 %v2470_v36, %v1710_v60 }
 0x49f   :  { %v2490_v62 = vpop.f32.mrb[40].mxu0 }
 0x4a0   :  { %v2512_v32 = vpop.f32.mrb[28].mxu1  ;;  %v2491_v43 = vpop.f32.mrb[41].mxu0 }
 0x4a1   :  { %v2513_v44 = vpop.f32.mrb[29].mxu1  ;;  %v2492_v63 = vadd.f32 %v2491_v43, %v2490_v62  ;;  %v2493_v1 = vpop.f32.mrb[42].mxu0 }
 0x4a2   :  { %v2514_v0 = vadd.f32 %v2513_v44, %v2512_v32  ;;  %v2515_v56 = vpop.f32.mrb[30].mxu1  ;;  %v2494_v21 = vpop.f32.mrb[43].mxu0 }
 0x4a3   :  { %v2516_v2 = vpop.f32.mrb[31].mxu1  ;;  %v1790_v16 = vadd.f32 %v2492_v63, %v1750_v61 }
 0x4a5   :  { %v1830_v11 = vadd.f32 %v2514_v0, %v1790_v16 }
 0x4bf   :  { %v2534_v17 = vpop.f32.mrb[44].mxu0 }
 0x4c0   :  { %v2556_v3 = vpop.f32.mrb[32].mxu1  ;;  %v2535_v4 = vpop.f32.mrb[45].mxu0 }
 0x4c1   :  { %v2557_v5 = vpop.f32.mrb[33].mxu1  ;;  %v2536_v6 = vadd.f32 %v2535_v4, %v2534_v17  ;;  %v2537_v38 = vpop.f32.mrb[46].mxu0 }
 0x4c2   :  { %v2558_v7 = vadd.f32 %v2557_v5, %v2556_v3  ;;  %v2559_v8 = vpop.f32.mrb[34].mxu1  ;;  %v2538_v9 = vpop.f32.mrb[47].mxu0 }
 0x4c3   :  { %v2560_v10 = vpop.f32.mrb[35].mxu1  ;;  %v1870_v34 = vadd.f32 %v2536_v6, %v1830_v11 }
 0x4c5   :  { %v1910_v35 = vadd.f32 %v2558_v7, %v1870_v34 }
 0x4df   :  { %v2578_v45 = vpop.f32.mrb[48].mxu0 }
 0x4e0   :  { %v2600_v12 = vpop.f32.mrb[36].mxu1  ;;  %v2579_v19 = vpop.f32.mrb[49].mxu0 }
 0x4e1   :  { %v2601_v26 = vpop.f32.mrb[37].mxu1  ;;  %v2580_v27 = vadd.f32 %v2579_v19, %v2578_v45  ;;  %v2581_v41 = vpop.f32.mrb[50].mxu0 }
 0x4e2   :  { %v2602_v25 = vadd.f32 %v2601_v26, %v2600_v12  ;;  %v2603_v42 = vpop.f32.mrb[38].mxu1  ;;  %v2582_v40 = vpop.f32.mrb[51].mxu0 }
 0x4e3   :  { %v2604_v28 = vpop.f32.mrb[39].mxu1  ;;  %v1950_v29 = vadd.f32 %v2580_v27, %v1910_v35 }
 0x4e5   :  { %v1990_v30 = vadd.f32 %v2602_v25, %v1950_v29 }
 0x4ff   :  { %v2622_v46 = vpop.f32.mrb[52].mxu0 }
 0x500   :  { %v2644_v47 = vpop.f32.mrb[40].mxu1  ;;  %v2623_v49 = vpop.f32.mrb[53].mxu0 }
 0x501   :  { %v2645_v13 = vpop.f32.mrb[41].mxu1  ;;  %v2624_v18 = vadd.f32 %v2623_v49, %v2622_v46  ;;  %v2625_v50 = vpop.f32.mrb[54].mxu0 }
 0x502   :  { %v2646_v24 = vadd.f32 %v2645_v13, %v2644_v47  ;;  %v2647_v51 = vpop.f32.mrb[42].mxu1  ;;  %v2626_v14 = vpop.f32.mrb[55].mxu0 }
 0x503   :  { %v2648_v31 = vpop.f32.mrb[43].mxu1  ;;  %v2030_v52 = vadd.f32 %v2624_v18, %v1990_v30 }
 0x505   :  { %v2070_v15 = vadd.f32 %v2646_v24, %v2030_v52 }
 0x507   :  { %v2079_v53 = vsel %vm2076_vm2, %v2070_v15, -1e+30 }
 0x508   :  { %v2081_v33 = vsel %vm2080_vm3, %v2079_v53, -inf }
 0x509   :  { %2082 = vmax.xlane.f32.xlu0 %v2081_v33 }
 0x596   :  { %v2083_v54 = vpop.xlane.xlu0 %2082 }
 0x597   :  { %v2084_v55 = vsub.f32 %v2079_v53, %v2083_v54 }
 0x599   :  { %v2085_v57 = vmul.f32 1.442695, %v2084_v55 }
 0x59b   :  { %2792 = vpow2.f32 %v2085_v57 }
 0x5a5   :  { %v2793_v22 = vpop.eup %2792 }
 0x5a6   :  { %v2087_v36 = vmul.f32 %v2793_v22, %v2182_v48 }
 0x5a8   :  { %v2088_v59 = vsel %vm2080_vm3, %v2087_v36, 0.0 }
 0x5a9   :  { %2089 = vadd.xlane.f32.xlu0 %v2088_v59 }
 0x636   :  { %v2090_v39 = vpop.xlane.xlu0 %2089 }
 0x637   :  { %v2091_v20 = vmax.f32 %v2090_v39, 1e-30 }
 0x639   :  { %2794 = vrcp.f32 %v2091_v20 }
 0x643   :  { %v2795_v23 = vpop.eup %2794 }
 0x644   :  { %v2093_v60 = vmul.f32 %v2795_v23, %v2087_v36 }
 0x646   :  { %2094 = vst [vmem:[%s3271_s11] sm:$0x1] %v2093_v60 }
 0x647   :  { %2099 = vsyncpa [#allocation5], 1 }
 0x648   :  { %2100 = vsyncpa [#allocation7], 1 }
 0x649   :  { %2101 = vsyncmov [#allocation3] }
 0x64c   :  { %s2102_s0 = vpop.sfrf %2101 }
 0x64d   :  { %p2183_p4 = scmp.ne.s32.totalorder %s2102_s0, 0 }
 0x64f   :  { %2106 = shalt.err (%p2183_p4)  }

</bundles_post_ra>
